<compile_context>
chip_gen: v7x
topology: tpu7x:2x2x1
jax: 0.10.0
libtpu: 0.0.40
codegen_flags: <defaults>
</compile_context>

<pallas_src>
import functools

import jax
import jax.numpy as jnp
from jax import lax
from jax.experimental import pallas as pl
from jax.experimental.pallas import tpu as pltpu

EPS = 1e-5
NEG_MASK = -1e30          # large finite negative instead of -inf (NaN-safe)
VMEM_LIMIT = 48 * 1024 * 1024   # portable: <= v7x's 64 MiB, well under 128 MiB


# ----------------------------- in-kernel helpers -----------------------------
def _gelu(x):
    # 0.5 * x * (1 + tanh(sqrt(2/pi) * (x + 0.044715 * x^3)))  (tanh approx,
    # matches the reference GELU module exactly)
    c = jnp.float32(0.7978845608028654)     # sqrt(2/pi)
    return 0.5 * x * (1.0 + jnp.tanh(c * (x + 0.044715 * (x * x * x))))


def _layernorm(x, scale, shift):
    # PyTorch LayerNorm semantics: biased variance (unbiased=False).
    mean = jnp.mean(x, axis=-1, keepdims=True)
    var = jnp.mean((x - mean) ** 2, axis=-1, keepdims=True)
    return scale * ((x - mean) * lax.rsqrt(var + EPS)) + shift


# ------------------------------- Pallas kernels -------------------------------
def transformer_block_kernel(num_heads, seqs_per_tile, seq_len,
                             x_ref, ln1s_ref, ln1b_ref,
                             wq_ref, wk_ref, wv_ref, wo_ref, bo_ref,
                             ln2s_ref, ln2b_ref,
                             w1_ref, b1_ref, w2_ref, b2_ref,
                             o_ref,
                             q_sc, k_sc, v_sc, ctx_sc):
    BB, T = seqs_per_tile, seq_len
    D = x_ref.shape[-1]
    H = num_heads
    hd = D // H

    x = x_ref[...]                                       # (BB*T, D), f32

    # ---- attention branch (pre-LN) ----
    xn_bf = _layernorm(x, ln1s_ref[...], ln1b_ref[...]).astype(jnp.bfloat16)
    # bf16 MXU operands, f32 accumulation; results parked in bf16 VMEM scratch
    # laid out (seq, T, D) so the per-sequence loop uses leading-dim indexing.
    q_sc[...] = jnp.dot(xn_bf, wq_ref[...],
                        preferred_element_type=jnp.float32
                        ).astype(jnp.bfloat16).reshape(BB, T, D)
    k_sc[...] = jnp.dot(xn_bf, wk_ref[...],
                        preferred_element_type=jnp.float32
                        ).astype(jnp.bfloat16).reshape(BB, T, D)
    v_sc[...] = jnp.dot(xn_bf, wv_ref[...],
                        preferred_element_type=jnp.float32
                        ).astype(jnp.bfloat16).reshape(BB, T, D)

    rows = lax.broadcasted_iota(jnp.int32, (T, T), 0)
    cols = lax.broadcasted_iota(jnp.int32, (T, T), 1)
    causal = cols > rows                                  # True above diagonal
    inv_sqrt_hd = jnp.float32(1.0 / (hd ** 0.5))
    # Contract the LAST axes of q and k -> q @ k^T without a materialized
    # transpose (MXU NT form).
    dims_nt = (((1,), (1,)), ((), ()))

    def seq_body(b, carry):
        for h in range(H):                                # static unroll, H small
            c0 = h * hd
            qh = q_sc[b, :, pl.ds(c0, hd)]                # (T, hd) bf16
            kh = k_sc[b, :, pl.ds(c0, hd)]
            vh = v_sc[b, :, pl.ds(c0, hd)]
            s = lax.dot_general(qh, kh, dims_nt,
                                preferred_element_type=jnp.float32)
            s = s * inv_sqrt_hd
            s = jnp.where(causal, NEG_MASK, s)
            m = jnp.max(s, axis=-1, keepdims=True)
            e = jnp.exp(s - m)
            inv_den = pl.reciprocal(jnp.sum(e, axis=-1, keepdims=True),
                                    approx=True)
            w = (e * inv_den).astype(jnp.bfloat16)
            ctx_sc[b, :, pl.ds(c0, hd)] = jnp.dot(
                w, vh, preferred_element_type=jnp.float32).astype(jnp.bfloat16)
        return carry

    # fori_loop (not a Python loop) so only one sequence's working set is live.
    lax.fori_loop(0, BB, seq_body, 0)

    attn_out = jnp.dot(ctx_sc[...].reshape(BB * T, D), wo_ref[...],
                       preferred_element_type=jnp.float32) + bo_ref[...]
    x = x + attn_out                                      # residual (dropout=id)

    # ---- feed-forward branch (pre-LN), chunked over the 4*D hidden dim ----
    xn2_bf = _layernorm(x, ln2s_ref[...], ln2b_ref[...]).astype(jnp.bfloat16)
    o_ref[...] = x + b2_ref[...]                          # residual + out bias
    n_chunks = w1_ref.shape[0]

    def ffn_body(c, carry):
        # w1_ref[c]: (D, C), b1_ref[c]: (1, C), w2_ref[c]: (C, D)
        h1 = jnp.dot(xn2_bf, w1_ref[c],
                     preferred_element_type=jnp.float32) + b1_ref[c]
        h1 = _gelu(h1)
        o_ref[...] += jnp.dot(h1.astype(jnp.bfloat16), w2_ref[c],
                              preferred_element_type=jnp.float32)
        return carry

    lax.fori_loop(0, n_chunks, ffn_body, 0)


def final_head_kernel(x_ref, lns_ref, lnb_ref, wout_ref, o_ref, xn_sc):
    # Final LayerNorm computed once per M tile (vocab tile j == 0) and reused
    # across all vocab tiles from bf16 VMEM scratch.
    @pl.when(pl.program_id(1) == 0)
    def _():
        xn_sc[...] = _layernorm(x_ref[...], lns_ref[...],
                                lnb_ref[...]).astype(jnp.bfloat16)

    o_ref[...] = jnp.dot(xn_sc[...], wout_ref[...],
                         preferred_element_type=jnp.float32)


# ------------------------------- host wrappers --------------------------------
def _round_up(x, m):
    return ((x + m - 1) // m) * m


def _pick_seqs_per_tile(n_seqs, seq_len, target_rows=1024):
    # Target ~1024 rows per tile (amortizes per-grid-step overhead, keeps VMEM
    # bounded) while guaranteeing >= 2 grid steps whenever possible so v7x's
    # two TensorCores both get work on the "parallel" axis.
    spt = max(1, target_rows // max(seq_len, 1))
    if n_seqs >= 2:
        spt = min(spt, n_seqs // 2)
    spt = max(1, min(spt, n_seqs))
    while n_seqs % spt:
        spt -= 1
    return spt


def _pick_ffn_chunk(hidden, target=512):
    if hidden <= target:
        return hidden
    for c in (target, 256, 128):
        if hidden % c == 0:
            return c
    return hidden


def _pick_tile_rows(m, target=1024):
    if m <= target:
        return m
    for tm in range(target, 7, -1):
        if m % tm == 0 and tm % 8 == 0:
            return tm
    return m


def run_transformer_block(x, blk, num_heads, seq_len):
    M, D = x.shape                                        # M = B * T (batch folded)
    n_seqs = M // seq_len
    seqs_per_tile = _pick_seqs_per_tile(n_seqs, seq_len)
    tile_m = seqs_per_tile * seq_len
    grid = (n_seqs // seqs_per_tile,)

    hidden = blk['w1'].shape[1]
    chunk = _pick_ffn_chunk(hidden)
    n_chunks = hidden // chunk
    # Pre-chunk the FFN weights so the kernel streams one hidden chunk at a
    # time via leading-dim dynamic indexing (no (tile_m, 4D) h1, no dynamic
    # lane slicing).
    w1_c = blk['w1'].reshape(D, n_chunks, chunk).transpose(1, 0, 2)
    b1_c = blk['b1'].reshape(n_chunks, 1, chunk)
    w2_c = blk['w2'].reshape(n_chunks, chunk, D)

    weights = [blk['ln1_s'], blk['ln1_b'],
               blk['wq'], blk['wk'], blk['wv'], blk['wo'], blk['bo'],
               blk['ln2_s'], blk['ln2_b'],
               w1_c, b1_c, w2_c, blk['b2']]

    in_specs = [pl.BlockSpec((tile_m, D), lambda i: (i, 0))]
    # Weights: full blocks with a constant index -> stay VMEM-resident.
    in_specs += [pl.BlockSpec(w.shape, lambda i, _nd=w.ndim: (0,) * _nd)
                 for w in weights]

    kernel = functools.partial(transformer_block_kernel,
                               num_heads, seqs_per_tile, seq_len)
    return pl.pallas_call(
        kernel,
        out_shape=jax.ShapeDtypeStruct((M, D), jnp.float32),
        grid=grid,
        in_specs=in_specs,
        out_specs=pl.BlockSpec((tile_m, D), lambda i: (i, 0)),
        scratch_shapes=[pltpu.VMEM((seqs_per_tile, seq_len, D), jnp.bfloat16),  # q
                        pltpu.VMEM((seqs_per_tile, seq_len, D), jnp.bfloat16),  # k
                        pltpu.VMEM((seqs_per_tile, seq_len, D), jnp.bfloat16),  # v
                        pltpu.VMEM((seqs_per_tile, seq_len, D), jnp.bfloat16)], # ctx
        compiler_params=pltpu.CompilerParams(
            dimension_semantics=("parallel",),
            vmem_limit_bytes=VMEM_LIMIT),
    )(x, *weights)


def run_final_head(x, ln_s, ln_b, w_out, target_tn=512):
    M, D = x.shape
    V = w_out.shape[1]
    TN = min(target_tn, _round_up(V, 128))                # lane-dense vocab tile
    V_pad = _round_up(V, TN)
    if V_pad != V:                                        # pad vocab up front so
        w_out = jnp.pad(w_out, ((0, 0), (0, V_pad - V)))  # tiling is always exact
    TM = _pick_tile_rows(M)
    grid = (M // TM, V_pad // TN)

    logits = pl.pallas_call(
        final_head_kernel,
        out_shape=jax.ShapeDtypeStruct((M, V_pad), jnp.float32),
        grid=grid,
        in_specs=[pl.BlockSpec((TM, D), lambda i, j: (i, 0)),
                  pl.BlockSpec(ln_s.shape, lambda i, j: (0, 0)),
                  pl.BlockSpec(ln_b.shape, lambda i, j: (0, 0)),
                  pl.BlockSpec((D, TN), lambda i, j: (0, j))],
        out_specs=pl.BlockSpec((TM, TN), lambda i, j: (i, j)),
        scratch_shapes=[pltpu.VMEM((TM, D), jnp.bfloat16)],   # LN(x), reused over j
        compiler_params=pltpu.CompilerParams(
            # vocab axis "arbitrary" so the j==0 LN-in-scratch reuse is safe.
            dimension_semantics=("parallel", "arbitrary"),
            vmem_limit_bytes=VMEM_LIMIT),
    )(x, ln_s, ln_b, w_out)

    if V_pad != V:
        logits = logits[:, :V]
    return logits


def gpt_forward(params, in_idx, cfg):
    B, T = in_idx.shape
    D, V = cfg['emb_dim'], cfg['vocab_size']
    tok = params['tok_emb'][in_idx]                       # (B, T, D) gather (glue)
    pos = params['pos_emb'][:T]                           # (T, D)
    x = (tok + pos[None, :, :]).astype(jnp.float32)       # drop_emb = identity
    x = x.reshape(B * T, D)                               # fold batch into MXU M dim
    for blk in params['blocks']:
        x = run_transformer_block(x, blk, cfg['n_heads'], T)
    logits = run_final_head(x, params['final_ln_s'], params['final_ln_b'],
                            params['out_w'])
    return logits.reshape(B, T, V)


# --------------------------- deterministic parameters --------------------------
def init_params(key, cfg):
    D, V, C = cfg['emb_dim'], cfg['vocab_size'], cfg['context_length']
    L = cfg['n_layers']

    def nrm(k, shape, dtype=jnp.float32):
        return (0.02 * jax.random.normal(k, shape, dtype=jnp.float32)).astype(dtype)

    keys = jax.random.split(key, 3 + L)
    params = {
        'tok_emb': nrm(keys[0], (V, D)),
        'pos_emb': nrm(keys[1], (C, D)),
        'out_w': nrm(keys[2], (D, V), jnp.bfloat16),      # stored (in, out)
        'final_ln_s': jnp.ones((1, D), jnp.float32),
        'final_ln_b': jnp.zeros((1, D), jnp.float32),
        'blocks': [],
    }
    for l in range(L):
        ks = jax.random.split(keys[3 + l], 6)
        params['blocks'].append(dict(
            ln1_s=jnp.ones((1, D), jnp.float32), ln1_b=jnp.zeros((1, D), jnp.float32),
            wq=nrm(ks[0], (D, D), jnp.bfloat16), wk=nrm(ks[1], (D, D), jnp.bfloat16),
            wv=nrm(ks[2], (D, D), jnp.bfloat16), wo=nrm(ks[3], (D, D), jnp.bfloat16),
            bo=jnp.zeros((1, D), jnp.float32),
            ln2_s=jnp.ones((1, D), jnp.float32), ln2_b=jnp.zeros((1, D), jnp.float32),
            w1=nrm(ks[4], (D, 4 * D), jnp.bfloat16), b1=jnp.zeros((1, 4 * D), jnp.float32),
            w2=nrm(ks[5], (4 * D, D), jnp.bfloat16), b2=jnp.zeros((1, D), jnp.float32),
        ))
    return params


# ------------------------------------ main -------------------------------------
if __name__ == "__main__":
    cfg = dict(vocab_size=256, context_length=8, emb_dim=32,
               n_heads=4, n_layers=2, drop_rate=0.0, qkv_bias=False)

    key = jax.random.PRNGKey(0)
    pkey, dkey = jax.random.split(key)
    params = init_params(pkey, cfg)

    B, T = 2, cfg['context_length']
    in_idx = jax.random.randint(dkey, (B, T), 0, cfg['vocab_size'], dtype=jnp.int32)

    logits = gpt_forward(params, in_idx, cfg)
    logits = jax.block_until_ready(logits)
    assert logits.shape == (B, T, cfg['vocab_size'])
    assert bool(jnp.all(jnp.isfinite(logits)))
    print("KERNEL_OK")
</pallas_src>

<mosaic_0001>
module attributes {stable_mosaic.version = 11 : i64} {
  func.func @transformer_block_kernel(%arg0: i32, %arg1: memref<8x32xf32, #tpu.memory_space<vmem>>, %arg2: memref<1x32xf32, #tpu.memory_space<vmem>>, %arg3: memref<1x32xf32, #tpu.memory_space<vmem>>, %arg4: memref<32x32xbf16, #tpu.memory_space<vmem>>, %arg5: memref<32x32xbf16, #tpu.memory_space<vmem>>, %arg6: memref<32x32xbf16, #tpu.memory_space<vmem>>, %arg7: memref<32x32xbf16, #tpu.memory_space<vmem>>, %arg8: memref<1x32xf32, #tpu.memory_space<vmem>>, %arg9: memref<1x32xf32, #tpu.memory_space<vmem>>, %arg10: memref<1x32xf32, #tpu.memory_space<vmem>>, %arg11: memref<1x32x128xbf16, #tpu.memory_space<vmem>>, %arg12: memref<1x1x128xf32, #tpu.memory_space<vmem>>, %arg13: memref<1x128x32xbf16, #tpu.memory_space<vmem>>, %arg14: memref<1x32xf32, #tpu.memory_space<vmem>>, %arg15: memref<8x32xf32, #tpu.memory_space<vmem>>, %arg16: memref<1x8x32xbf16, #tpu.memory_space<vmem>>, %arg17: memref<1x8x32xbf16, #tpu.memory_space<vmem>>, %arg18: memref<1x8x32xbf16, #tpu.memory_space<vmem>>, %arg19: memref<1x8x32xbf16, #tpu.memory_space<vmem>>) attributes {dimension_semantics = [#tpu.dimension_semantics<parallel>], iteration_bounds = array<i64: 2>, scalar_prefetch = 0 : i64, scratch_operands = 4 : i64, tpu.core_type = #tpu.core_type<tc>, window_params = [{transform_indices = @transform_0, window_bounds = array<i64: 8, 32>}, {pipeline_mode = #tpu.pipeline_mode<synchronous>, transform_indices = @transform_1, window_bounds = array<i64: 1, 32>}, {pipeline_mode = #tpu.pipeline_mode<synchronous>, transform_indices = @transform_2, window_bounds = array<i64: 1, 32>}, {pipeline_mode = #tpu.pipeline_mode<synchronous>, transform_indices = @transform_3, window_bounds = array<i64: 32, 32>}, {pipeline_mode = #tpu.pipeline_mode<synchronous>, transform_indices = @transform_4, window_bounds = array<i64: 32, 32>}, {pipeline_mode = #tpu.pipeline_mode<synchronous>, transform_indices = @transform_5, window_bounds = array<i64: 32, 32>}, {pipeline_mode = #tpu.pipeline_mode<synchronous>, transform_indices = @transform_6, window_bounds = array<i64: 32, 32>}, {pipeline_mode = #tpu.pipeline_mode<synchronous>, transform_indices = @transform_7, window_bounds = array<i64: 1, 32>}, {pipeline_mode = #tpu.pipeline_mode<synchronous>, transform_indices = @transform_8, window_bounds = array<i64: 1, 32>}, {pipeline_mode = #tpu.pipeline_mode<synchronous>, transform_indices = @transform_9, window_bounds = array<i64: 1, 32>}, {pipeline_mode = #tpu.pipeline_mode<synchronous>, transform_indices = @transform_10, window_bounds = array<i64: 1, 32, 128>}, {pipeline_mode = #tpu.pipeline_mode<synchronous>, transform_indices = @transform_11, window_bounds = array<i64: 1, 1, 128>}, {pipeline_mode = #tpu.pipeline_mode<synchronous>, transform_indices = @transform_12, window_bounds = array<i64: 1, 128, 32>}, {pipeline_mode = #tpu.pipeline_mode<synchronous>, transform_indices = @transform_13, window_bounds = array<i64: 1, 32>}, {transform_indices = @transform_14, window_bounds = array<i64: 8, 32>}]} {
    %c0 = arith.constant 0 : index
    %c0_0 = arith.constant 0 : index
    %0 = vector.load %arg1[%c0, %c0_0] : memref<8x32xf32, #tpu.memory_space<vmem>>, vector<8x32xf32>
    %c0_1 = arith.constant 0 : index
    %c0_2 = arith.constant 0 : index
    %1 = vector.load %arg2[%c0_1, %c0_2] : memref<1x32xf32, #tpu.memory_space<vmem>>, vector<1x32xf32>
    %c0_3 = arith.constant 0 : index
    %c0_4 = arith.constant 0 : index
    %2 = vector.load %arg3[%c0_3, %c0_4] : memref<1x32xf32, #tpu.memory_space<vmem>>, vector<1x32xf32>
    %cst = arith.constant dense<0.000000e+00> : vector<8xf32>
    %3 = vector.multi_reduction <add>, %0, %cst [1] : vector<8x32xf32> to vector<8xf32>
    %4 = vector.shape_cast %3 : vector<8xf32> to vector<8x1xf32>
    %cst_5 = arith.constant 3.200000e+01 : f32
    %5 = vector.broadcast %cst_5 : f32 to vector<8x1xf32>
    %6 = arith.divf %4, %5 : vector<8x1xf32>
    %7 = vector.broadcast %6 : vector<8x1xf32> to vector<8x32xf32>
    %8 = arith.subf %0, %7 : vector<8x32xf32>
    %9 = arith.mulf %8, %8 : vector<8x32xf32>
    %cst_6 = arith.constant dense<0.000000e+00> : vector<8xf32>
    %10 = vector.multi_reduction <add>, %9, %cst_6 [1] : vector<8x32xf32> to vector<8xf32>
    %11 = vector.shape_cast %10 : vector<8xf32> to vector<8x1xf32>
    %cst_7 = arith.constant 3.200000e+01 : f32
    %12 = vector.broadcast %cst_7 : f32 to vector<8x1xf32>
    %13 = arith.divf %11, %12 : vector<8x1xf32>
    %14 = vector.broadcast %6 : vector<8x1xf32> to vector<8x32xf32>
    %15 = arith.subf %0, %14 : vector<8x32xf32>
    %cst_8 = arith.constant 9.99999974E-6 : f32
    %16 = vector.broadcast %cst_8 : f32 to vector<8x1xf32>
    %17 = arith.addf %13, %16 : vector<8x1xf32>
    %18 = math.rsqrt %17 : vector<8x1xf32>
    %19 = vector.broadcast %18 : vector<8x1xf32> to vector<8x32xf32>
    %20 = arith.mulf %15, %19 : vector<8x32xf32>
    %21 = vector.broadcast %1 : vector<1x32xf32> to vector<8x32xf32>
    %22 = arith.mulf %21, %20 : vector<8x32xf32>
    %23 = vector.broadcast %2 : vector<1x32xf32> to vector<8x32xf32>
    %24 = arith.addf %22, %23 : vector<8x32xf32>
    %25 = arith.truncf %24 : vector<8x32xf32> to vector<8x32xbf16>
    %c0_9 = arith.constant 0 : index
    %c0_10 = arith.constant 0 : index
    %26 = vector.load %arg4[%c0_9, %c0_10] : memref<32x32xbf16, #tpu.memory_space<vmem>>, vector<32x32xbf16>
    %cst_11 = arith.constant dense<0.000000e+00> : vector<8x32xf32>
    %27 = tpu.matmul %25, %26, %cst_11 {dimension_numbers = #tpu.dot_dimension_numbers<[1], [0], [0], [1], [0, 0, 1, 1], [], []>} : vector<8x32xbf16>, vector<32x32xbf16>, vector<8x32xf32> -> vector<8x32xf32>
    %28 = arith.truncf %27 : vector<8x32xf32> to vector<8x32xbf16>
    %29 = vector.shape_cast %28 : vector<8x32xbf16> to vector<1x8x32xbf16>
    %c0_12 = arith.constant 0 : index
    %c0_13 = arith.constant 0 : index
    %c0_14 = arith.constant 0 : index
    %30 = vector.load %arg16[%c0_12, %c0_13, %c0_14] : memref<1x8x32xbf16, #tpu.memory_space<vmem>>, vector<1x8x32xbf16>
    tpu.vector_store %arg16[%c0_12, %c0_13, %c0_14], %29 {strides = array<i32>} : memref<1x8x32xbf16, #tpu.memory_space<vmem>>, vector<1x8x32xbf16>,
    %c0_15 = arith.constant 0 : index
    %c0_16 = arith.constant 0 : index
    %31 = vector.load %arg5[%c0_15, %c0_16] : memref<32x32xbf16, #tpu.memory_space<vmem>>, vector<32x32xbf16>
    %cst_17 = arith.constant dense<0.000000e+00> : vector<8x32xf32>
    %32 = tpu.matmul %25, %31, %cst_17 {dimension_numbers = #tpu.dot_dimension_numbers<[1], [0], [0], [1], [0, 0, 1, 1], [], []>} : vector<8x32xbf16>, vector<32x32xbf16>, vector<8x32xf32> -> vector<8x32xf32>
    %33 = arith.truncf %32 : vector<8x32xf32> to vector<8x32xbf16>
    %34 = vector.shape_cast %33 : vector<8x32xbf16> to vector<1x8x32xbf16>
    %c0_18 = arith.constant 0 : index
    %c0_19 = arith.constant 0 : index
    %c0_20 = arith.constant 0 : index
    %35 = vector.load %arg17[%c0_18, %c0_19, %c0_20] : memref<1x8x32xbf16, #tpu.memory_space<vmem>>, vector<1x8x32xbf16>
    tpu.vector_store %arg17[%c0_18, %c0_19, %c0_20], %34 {strides = array<i32>} : memref<1x8x32xbf16, #tpu.memory_space<vmem>>, vector<1x8x32xbf16>,
    %c0_21 = arith.constant 0 : index
    %c0_22 = arith.constant 0 : index
    %36 = vector.load %arg6[%c0_21, %c0_22] : memref<32x32xbf16, #tpu.memory_space<vmem>>, vector<32x32xbf16>
    %cst_23 = arith.constant dense<0.000000e+00> : vector<8x32xf32>
    %37 = tpu.matmul %25, %36, %cst_23 {dimension_numbers = #tpu.dot_dimension_numbers<[1], [0], [0], [1], [0, 0, 1, 1], [], []>} : vector<8x32xbf16>, vector<32x32xbf16>, vector<8x32xf32> -> vector<8x32xf32>
    %38 = arith.truncf %37 : vector<8x32xf32> to vector<8x32xbf16>
    %39 = vector.shape_cast %38 : vector<8x32xbf16> to vector<1x8x32xbf16>
    %c0_24 = arith.constant 0 : index
    %c0_25 = arith.constant 0 : index
    %c0_26 = arith.constant 0 : index
    %40 = vector.load %arg18[%c0_24, %c0_25, %c0_26] : memref<1x8x32xbf16, #tpu.memory_space<vmem>>, vector<1x8x32xbf16>
    tpu.vector_store %arg18[%c0_24, %c0_25, %c0_26], %39 {strides = array<i32>} : memref<1x8x32xbf16, #tpu.memory_space<vmem>>, vector<1x8x32xbf16>,
    %41 = tpu.iota {dimensions = array<i32: 0>} : vector<8x8xi32>
    %42 = tpu.iota {dimensions = array<i32: 1>} : vector<8x8xi32>
    %43 = arith.cmpi sgt, %42, %41 : vector<8x8xi32>
    %cst_27 = arith.constant 0.353553385 : f32
    %c0_i32 = arith.constant 0 : i32
    %44 = arith.index_cast %c0_i32 : i32 to index
    %c0_28 = arith.constant 0 : index
    %c0_29 = arith.constant 0 : index
    %45 = vector.load %arg16[%44, %c0_28, %c0_29] : memref<1x8x32xbf16, #tpu.memory_space<vmem>>, vector<1x8x8xbf16>
    %46 = vector.shape_cast %45 : vector<1x8x8xbf16> to vector<8x8xbf16>
    %47 = arith.index_cast %c0_i32 : i32 to index
    %c0_30 = arith.constant 0 : index
    %c0_31 = arith.constant 0 : index
    %48 = vector.load %arg17[%47, %c0_30, %c0_31] : memref<1x8x32xbf16, #tpu.memory_space<vmem>>, vector<1x8x8xbf16>
    %49 = vector.shape_cast %48 : vector<1x8x8xbf16> to vector<8x8xbf16>
    %50 = arith.index_cast %c0_i32 : i32 to index
    %c0_32 = arith.constant 0 : index
    %c0_33 = arith.constant 0 : index
    %51 = vector.load %arg18[%50, %c0_32, %c0_33] : memref<1x8x32xbf16, #tpu.memory_space<vmem>>, vector<1x8x8xbf16>
    %52 = vector.shape_cast %51 : vector<1x8x8xbf16> to vector<8x8xbf16>
    %cst_34 = arith.constant dense<0.000000e+00> : vector<8x8xf32>
    %53 = tpu.matmul %46, %49, %cst_34 {dimension_numbers = #tpu.dot_dimension_numbers<[1], [1], [0], [0], [0, 0, 1, 0], [], []>} : vector<8x8xbf16>, vector<8x8xbf16>, vector<8x8xf32> -> vector<8x8xf32>
    %54 = vector.broadcast %cst_27 : f32 to vector<8x8xf32>
    %55 = arith.mulf %53, %54 : vector<8x8xf32>
    %cst_35 = arith.constant -1.000000e+30 : f32
    %56 = vector.broadcast %cst_35 : f32 to vector<8x8xf32>
    %57 = arith.select %43, %56, %55 : vector<8x8xi1>, vector<8x8xf32>
    %cst_36 = arith.constant dense<0xFF800000> : vector<8xf32>
    %58 = vector.multi_reduction <maximumf>, %57, %cst_36 [1] : vector<8x8xf32> to vector<8xf32>
    %59 = vector.shape_cast %58 : vector<8xf32> to vector<8x1xf32>
    %60 = vector.broadcast %59 : vector<8x1xf32> to vector<8x8xf32>
    %61 = arith.subf %57, %60 : vector<8x8xf32>
    %62 = math.exp %61 : vector<8x8xf32>
    %cst_37 = arith.constant dense<0.000000e+00> : vector<8xf32>
    %63 = vector.multi_reduction <add>, %62, %cst_37 [1] : vector<8x8xf32> to vector<8xf32>
    %64 = vector.shape_cast %63 : vector<8xf32> to vector<8x1xf32>
    %65 = tpu.reciprocal %64 {approx = true} : vector<8x1xf32> -> vector<8x1xf32>
    %66 = vector.broadcast %65 : vector<8x1xf32> to vector<8x8xf32>
    %67 = arith.mulf %62, %66 : vector<8x8xf32>
    %68 = arith.truncf %67 : vector<8x8xf32> to vector<8x8xbf16>
    %cst_38 = arith.constant dense<0.000000e+00> : vector<8x8xf32>
    %69 = tpu.matmul %68, %52, %cst_38 {dimension_numbers = #tpu.dot_dimension_numbers<[1], [0], [0], [1], [0, 0, 1, 1], [], []>} : vector<8x8xbf16>, vector<8x8xbf16>, vector<8x8xf32> -> vector<8x8xf32>
    %70 = arith.truncf %69 : vector<8x8xf32> to vector<8x8xbf16>
    %71 = arith.index_cast %c0_i32 : i32 to index
    %c0_39 = arith.constant 0 : index
    %c0_40 = arith.constant 0 : index
    %72 = vector.load %arg19[%71, %c0_39, %c0_40] : memref<1x8x32xbf16, #tpu.memory_space<vmem>>, vector<1x8x8xbf16>
    %73 = vector.shape_cast %72 : vector<1x8x8xbf16> to vector<8x8xbf16>
    %74 = vector.shape_cast %70 : vector<8x8xbf16> to vector<1x8x8xbf16>
    tpu.vector_store %arg19[%71, %c0_39, %c0_40], %74 {strides = array<i32>} : memref<1x8x32xbf16, #tpu.memory_space<vmem>>, vector<1x8x8xbf16>,
    %75 = arith.index_cast %c0_i32 : i32 to index
    %c0_41 = arith.constant 0 : index
    %c8 = arith.constant 8 : index
    %76 = vector.load %arg16[%75, %c0_41, %c8] : memref<1x8x32xbf16, #tpu.memory_space<vmem>>, vector<1x8x8xbf16>
    %77 = vector.shape_cast %76 : vector<1x8x8xbf16> to vector<8x8xbf16>
    %78 = arith.index_cast %c0_i32 : i32 to index
    %c0_42 = arith.constant 0 : index
    %c8_43 = arith.constant 8 : index
    %79 = vector.load %arg17[%78, %c0_42, %c8_43] : memref<1x8x32xbf16, #tpu.memory_space<vmem>>, vector<1x8x8xbf16>
    %80 = vector.shape_cast %79 : vector<1x8x8xbf16> to vector<8x8xbf16>
    %81 = arith.index_cast %c0_i32 : i32 to index
    %c0_44 = arith.constant 0 : index
    %c8_45 = arith.constant 8 : index
    %82 = vector.load %arg18[%81, %c0_44, %c8_45] : memref<1x8x32xbf16, #tpu.memory_space<vmem>>, vector<1x8x8xbf16>
    %83 = vector.shape_cast %82 : vector<1x8x8xbf16> to vector<8x8xbf16>
    %cst_46 = arith.constant dense<0.000000e+00> : vector<8x8xf32>
    %84 = tpu.matmul %77, %80, %cst_46 {dimension_numbers = #tpu.dot_dimension_numbers<[1], [1], [0], [0], [0, 0, 1, 0], [], []>} : vector<8x8xbf16>, vector<8x8xbf16>, vector<8x8xf32> -> vector<8x8xf32>
    %85 = vector.broadcast %cst_27 : f32 to vector<8x8xf32>
    %86 = arith.mulf %84, %85 : vector<8x8xf32>
    %cst_47 = arith.constant -1.000000e+30 : f32
    %87 = vector.broadcast %cst_47 : f32 to vector<8x8xf32>
    %88 = arith.select %43, %87, %86 : vector<8x8xi1>, vector<8x8xf32>
    %cst_48 = arith.constant dense<0xFF800000> : vector<8xf32>
    %89 = vector.multi_reduction <maximumf>, %88, %cst_48 [1] : vector<8x8xf32> to vector<8xf32>
    %90 = vector.shape_cast %89 : vector<8xf32> to vector<8x1xf32>
    %91 = vector.broadcast %90 : vector<8x1xf32> to vector<8x8xf32>
    %92 = arith.subf %88, %91 : vector<8x8xf32>
    %93 = math.exp %92 : vector<8x8xf32>
    %cst_49 = arith.constant dense<0.000000e+00> : vector<8xf32>
    %94 = vector.multi_reduction <add>, %93, %cst_49 [1] : vector<8x8xf32> to vector<8xf32>
    %95 = vector.shape_cast %94 : vector<8xf32> to vector<8x1xf32>
    %96 = tpu.reciprocal %95 {approx = true} : vector<8x1xf32> -> vector<8x1xf32>
    %97 = vector.broadcast %96 : vector<8x1xf32> to vector<8x8xf32>
    %98 = arith.mulf %93, %97 : vector<8x8xf32>
    %99 = arith.truncf %98 : vector<8x8xf32> to vector<8x8xbf16>
    %cst_50 = arith.constant dense<0.000000e+00> : vector<8x8xf32>
    %100 = tpu.matmul %99, %83, %cst_50 {dimension_numbers = #tpu.dot_dimension_numbers<[1], [0], [0], [1], [0, 0, 1, 1], [], []>} : vector<8x8xbf16>, vector<8x8xbf16>, vector<8x8xf32> -> vector<8x8xf32>
    %101 = arith.truncf %100 : vector<8x8xf32> to vector<8x8xbf16>
    %102 = arith.index_cast %c0_i32 : i32 to index
    %c0_51 = arith.constant 0 : index
    %c8_52 = arith.constant 8 : index
    %103 = vector.load %arg19[%102, %c0_51, %c8_52] : memref<1x8x32xbf16, #tpu.memory_space<vmem>>, vector<1x8x8xbf16>
    %104 = vector.shape_cast %103 : vector<1x8x8xbf16> to vector<8x8xbf16>
    %105 = vector.shape_cast %101 : vector<8x8xbf16> to vector<1x8x8xbf16>
    tpu.vector_store %arg19[%102, %c0_51, %c8_52], %105 {strides = array<i32>} : memref<1x8x32xbf16, #tpu.memory_space<vmem>>, vector<1x8x8xbf16>,
    %106 = arith.index_cast %c0_i32 : i32 to index
    %c0_53 = arith.constant 0 : index
    %c16 = arith.constant 16 : index
    %107 = vector.load %arg16[%106, %c0_53, %c16] : memref<1x8x32xbf16, #tpu.memory_space<vmem>>, vector<1x8x8xbf16>
    %108 = vector.shape_cast %107 : vector<1x8x8xbf16> to vector<8x8xbf16>
    %109 = arith.index_cast %c0_i32 : i32 to index
    %c0_54 = arith.constant 0 : index
    %c16_55 = arith.constant 16 : index
    %110 = vector.load %arg17[%109, %c0_54, %c16_55] : memref<1x8x32xbf16, #tpu.memory_space<vmem>>, vector<1x8x8xbf16>
    %111 = vector.shape_cast %110 : vector<1x8x8xbf16> to vector<8x8xbf16>
    %112 = arith.index_cast %c0_i32 : i32 to index
    %c0_56 = arith.constant 0 : index
    %c16_57 = arith.constant 16 : index
    %113 = vector.load %arg18[%112, %c0_56, %c16_57] : memref<1x8x32xbf16, #tpu.memory_space<vmem>>, vector<1x8x8xbf16>
    %114 = vector.shape_cast %113 : vector<1x8x8xbf16> to vector<8x8xbf16>
    %cst_58 = arith.constant dense<0.000000e+00> : vector<8x8xf32>
    %115 = tpu.matmul %108, %111, %cst_58 {dimension_numbers = #tpu.dot_dimension_numbers<[1], [1], [0], [0], [0, 0, 1, 0], [], []>} : vector<8x8xbf16>, vector<8x8xbf16>, vector<8x8xf32> -> vector<8x8xf32>
    %116 = vector.broadcast %cst_27 : f32 to vector<8x8xf32>
    %117 = arith.mulf %115, %116 : vector<8x8xf32>
    %cst_59 = arith.constant -1.000000e+30 : f32
    %118 = vector.broadcast %cst_59 : f32 to vector<8x8xf32>
    %119 = arith.select %43, %118, %117 : vector<8x8xi1>, vector<8x8xf32>
    %cst_60 = arith.constant dense<0xFF800000> : vector<8xf32>
    %120 = vector.multi_reduction <maximumf>, %119, %cst_60 [1] : vector<8x8xf32> to vector<8xf32>
    %121 = vector.shape_cast %120 : vector<8xf32> to vector<8x1xf32>
    %122 = vector.broadcast %121 : vector<8x1xf32> to vector<8x8xf32>
    %123 = arith.subf %119, %122 : vector<8x8xf32>
    %124 = math.exp %123 : vector<8x8xf32>
    %cst_61 = arith.constant dense<0.000000e+00> : vector<8xf32>
    %125 = vector.multi_reduction <add>, %124, %cst_61 [1] : vector<8x8xf32> to vector<8xf32>
    %126 = vector.shape_cast %125 : vector<8xf32> to vector<8x1xf32>
    %127 = tpu.reciprocal %126 {approx = true} : vector<8x1xf32> -> vector<8x1xf32>
    %128 = vector.broadcast %127 : vector<8x1xf32> to vector<8x8xf32>
    %129 = arith.mulf %124, %128 : vector<8x8xf32>
    %130 = arith.truncf %129 : vector<8x8xf32> to vector<8x8xbf16>
    %cst_62 = arith.constant dense<0.000000e+00> : vector<8x8xf32>
    %131 = tpu.matmul %130, %114, %cst_62 {dimension_numbers = #tpu.dot_dimension_numbers<[1], [0], [0], [1], [0, 0, 1, 1], [], []>} : vector<8x8xbf16>, vector<8x8xbf16>, vector<8x8xf32> -> vector<8x8xf32>
    %132 = arith.truncf %131 : vector<8x8xf32> to vector<8x8xbf16>
    %133 = arith.index_cast %c0_i32 : i32 to index
    %c0_63 = arith.constant 0 : index
    %c16_64 = arith.constant 16 : index
    %134 = vector.load %arg19[%133, %c0_63, %c16_64] : memref<1x8x32xbf16, #tpu.memory_space<vmem>>, vector<1x8x8xbf16>
    %135 = vector.shape_cast %134 : vector<1x8x8xbf16> to vector<8x8xbf16>
    %136 = vector.shape_cast %132 : vector<8x8xbf16> to vector<1x8x8xbf16>
    tpu.vector_store %arg19[%133, %c0_63, %c16_64], %136 {strides = array<i32>} : memref<1x8x32xbf16, #tpu.memory_space<vmem>>, vector<1x8x8xbf16>,
    %137 = arith.index_cast %c0_i32 : i32 to index
    %c0_65 = arith.constant 0 : index
    %c24 = arith.constant 24 : index
    %138 = vector.load %arg16[%137, %c0_65, %c24] : memref<1x8x32xbf16, #tpu.memory_space<vmem>>, vector<1x8x8xbf16>
    %139 = vector.shape_cast %138 : vector<1x8x8xbf16> to vector<8x8xbf16>
    %140 = arith.index_cast %c0_i32 : i32 to index
    %c0_66 = arith.constant 0 : index
    %c24_67 = arith.constant 24 : index
    %141 = vector.load %arg17[%140, %c0_66, %c24_67] : memref<1x8x32xbf16, #tpu.memory_space<vmem>>, vector<1x8x8xbf16>
    %142 = vector.shape_cast %141 : vector<1x8x8xbf16> to vector<8x8xbf16>
    %143 = arith.index_cast %c0_i32 : i32 to index
    %c0_68 = arith.constant 0 : index
    %c24_69 = arith.constant 24 : index
    %144 = vector.load %arg18[%143, %c0_68, %c24_69] : memref<1x8x32xbf16, #tpu.memory_space<vmem>>, vector<1x8x8xbf16>
    %145 = vector.shape_cast %144 : vector<1x8x8xbf16> to vector<8x8xbf16>
    %cst_70 = arith.constant dense<0.000000e+00> : vector<8x8xf32>
    %146 = tpu.matmul %139, %142, %cst_70 {dimension_numbers = #tpu.dot_dimension_numbers<[1], [1], [0], [0], [0, 0, 1, 0], [], []>} : vector<8x8xbf16>, vector<8x8xbf16>, vector<8x8xf32> -> vector<8x8xf32>
    %147 = vector.broadcast %cst_27 : f32 to vector<8x8xf32>
    %148 = arith.mulf %146, %147 : vector<8x8xf32>
    %cst_71 = arith.constant -1.000000e+30 : f32
    %149 = vector.broadcast %cst_71 : f32 to vector<8x8xf32>
    %150 = arith.select %43, %149, %148 : vector<8x8xi1>, vector<8x8xf32>
    %cst_72 = arith.constant dense<0xFF800000> : vector<8xf32>
    %151 = vector.multi_reduction <maximumf>, %150, %cst_72 [1] : vector<8x8xf32> to vector<8xf32>
    %152 = vector.shape_cast %151 : vector<8xf32> to vector<8x1xf32>
    %153 = vector.broadcast %152 : vector<8x1xf32> to vector<8x8xf32>
    %154 = arith.subf %150, %153 : vector<8x8xf32>
    %155 = math.exp %154 : vector<8x8xf32>
    %cst_73 = arith.constant dense<0.000000e+00> : vector<8xf32>
    %156 = vector.multi_reduction <add>, %155, %cst_73 [1] : vector<8x8xf32> to vector<8xf32>
    %157 = vector.shape_cast %156 : vector<8xf32> to vector<8x1xf32>
    %158 = tpu.reciprocal %157 {approx = true} : vector<8x1xf32> -> vector<8x1xf32>
    %159 = vector.broadcast %158 : vector<8x1xf32> to vector<8x8xf32>
    %160 = arith.mulf %155, %159 : vector<8x8xf32>
    %161 = arith.truncf %160 : vector<8x8xf32> to vector<8x8xbf16>
    %cst_74 = arith.constant dense<0.000000e+00> : vector<8x8xf32>
    %162 = tpu.matmul %161, %145, %cst_74 {dimension_numbers = #tpu.dot_dimension_numbers<[1], [0], [0], [1], [0, 0, 1, 1], [], []>} : vector<8x8xbf16>, vector<8x8xbf16>, vector<8x8xf32> -> vector<8x8xf32>
    %163 = arith.truncf %162 : vector<8x8xf32> to vector<8x8xbf16>
    %164 = arith.index_cast %c0_i32 : i32 to index
    %c0_75 = arith.constant 0 : index
    %c24_76 = arith.constant 24 : index
    %165 = vector.load %arg19[%164, %c0_75, %c24_76] : memref<1x8x32xbf16, #tpu.memory_space<vmem>>, vector<1x8x8xbf16>
    %166 = vector.shape_cast %165 : vector<1x8x8xbf16> to vector<8x8xbf16>
    %167 = vector.shape_cast %163 : vector<8x8xbf16> to vector<1x8x8xbf16>
    tpu.vector_store %arg19[%164, %c0_75, %c24_76], %167 {strides = array<i32>} : memref<1x8x32xbf16, #tpu.memory_space<vmem>>, vector<1x8x8xbf16>,
    %c1_i32 = arith.constant 1 : i32
    %c0_77 = arith.constant 0 : index
    %c0_78 = arith.constant 0 : index
    %c0_79 = arith.constant 0 : index
    %168 = vector.load %arg19[%c0_77, %c0_78, %c0_79] : memref<1x8x32xbf16, #tpu.memory_space<vmem>>, vector<1x8x32xbf16>
    %169 = vector.shape_cast %168 : vector<1x8x32xbf16> to vector<8x32xbf16>
    %c0_80 = arith.constant 0 : index
    %c0_81 = arith.constant 0 : index
    %170 = vector.load %arg7[%c0_80, %c0_81] : memref<32x32xbf16, #tpu.memory_space<vmem>>, vector<32x32xbf16>
    %cst_82 = arith.constant dense<0.000000e+00> : vector<8x32xf32>
    %171 = tpu.matmul %169, %170, %cst_82 {dimension_numbers = #tpu.dot_dimension_numbers<[1], [0], [0], [1], [0, 0, 1, 1], [], []>} : vector<8x32xbf16>, vector<32x32xbf16>, vector<8x32xf32> -> vector<8x32xf32>
    %c0_83 = arith.constant 0 : index
    %c0_84 = arith.constant 0 : index
    %172 = vector.load %arg8[%c0_83, %c0_84] : memref<1x32xf32, #tpu.memory_space<vmem>>, vector<1x32xf32>
    %173 = vector.broadcast %172 : vector<1x32xf32> to vector<8x32xf32>
    %174 = arith.addf %171, %173 : vector<8x32xf32>
    %175 = arith.addf %0, %174 : vector<8x32xf32>
    %c0_85 = arith.constant 0 : index
    %c0_86 = arith.constant 0 : index
    %176 = vector.load %arg9[%c0_85, %c0_86] : memref<1x32xf32, #tpu.memory_space<vmem>>, vector<1x32xf32>
    %c0_87 = arith.constant 0 : index
    %c0_88 = arith.constant 0 : index
    %177 = vector.load %arg10[%c0_87, %c0_88] : memref<1x32xf32, #tpu.memory_space<vmem>>, vector<1x32xf32>
    %cst_89 = arith.constant dense<0.000000e+00> : vector<8xf32>
    %178 = vector.multi_reduction <add>, %175, %cst_89 [1] : vector<8x32xf32> to vector<8xf32>
    %179 = vector.shape_cast %178 : vector<8xf32> to vector<8x1xf32>
    %cst_90 = arith.constant 3.200000e+01 : f32
    %180 = vector.broadcast %cst_90 : f32 to vector<8x1xf32>
    %181 = arith.divf %179, %180 : vector<8x1xf32>
    %182 = vector.broadcast %181 : vector<8x1xf32> to vector<8x32xf32>
    %183 = arith.subf %175, %182 : vector<8x32xf32>
    %184 = arith.mulf %183, %183 : vector<8x32xf32>
    %cst_91 = arith.constant dense<0.000000e+00> : vector<8xf32>
    %185 = vector.multi_reduction <add>, %184, %cst_91 [1] : vector<8x32xf32> to vector<8xf32>
    %186 = vector.shape_cast %185 : vector<8xf32> to vector<8x1xf32>
    %cst_92 = arith.constant 3.200000e+01 : f32
    %187 = vector.broadcast %cst_92 : f32 to vector<8x1xf32>
    %188 = arith.divf %186, %187 : vector<8x1xf32>
    %189 = vector.broadcast %181 : vector<8x1xf32> to vector<8x32xf32>
    %190 = arith.subf %175, %189 : vector<8x32xf32>
    %cst_93 = arith.constant 9.99999974E-6 : f32
    %191 = vector.broadcast %cst_93 : f32 to vector<8x1xf32>
    %192 = arith.addf %188, %191 : vector<8x1xf32>
    %193 = math.rsqrt %192 : vector<8x1xf32>
    %194 = vector.broadcast %193 : vector<8x1xf32> to vector<8x32xf32>
    %195 = arith.mulf %190, %194 : vector<8x32xf32>
    %196 = vector.broadcast %176 : vector<1x32xf32> to vector<8x32xf32>
    %197 = arith.mulf %196, %195 : vector<8x32xf32>
    %198 = vector.broadcast %177 : vector<1x32xf32> to vector<8x32xf32>
    %199 = arith.addf %197, %198 : vector<8x32xf32>
    %200 = arith.truncf %199 : vector<8x32xf32> to vector<8x32xbf16>
    %c0_94 = arith.constant 0 : index
    %c0_95 = arith.constant 0 : index
    %201 = vector.load %arg14[%c0_94, %c0_95] : memref<1x32xf32, #tpu.memory_space<vmem>>, vector<1x32xf32>
    %202 = vector.broadcast %201 : vector<1x32xf32> to vector<8x32xf32>
    %203 = arith.addf %175, %202 : vector<8x32xf32>
    %c0_96 = arith.constant 0 : index
    %c0_97 = arith.constant 0 : index
    %204 = vector.load %arg15[%c0_96, %c0_97] : memref<8x32xf32, #tpu.memory_space<vmem>>, vector<8x32xf32>
    tpu.vector_store %arg15[%c0_96, %c0_97], %203 {strides = array<i32>} : memref<8x32xf32, #tpu.memory_space<vmem>>, vector<8x32xf32>,
    %c0_i32_98 = arith.constant 0 : i32
    %205 = arith.index_cast %c0_i32_98 : i32 to index
    %c0_99 = arith.constant 0 : index
    %c0_100 = arith.constant 0 : index
    %206 = vector.load %arg11[%205, %c0_99, %c0_100] : memref<1x32x128xbf16, #tpu.memory_space<vmem>>, vector<1x32x128xbf16>
    %207 = vector.shape_cast %206 : vector<1x32x128xbf16> to vector<32x128xbf16>
    %cst_101 = arith.constant dense<0.000000e+00> : vector<8x128xf32>
    %208 = tpu.matmul %200, %207, %cst_101 {dimension_numbers = #tpu.dot_dimension_numbers<[1], [0], [0], [1], [0, 0, 1, 1], [], []>} : vector<8x32xbf16>, vector<32x128xbf16>, vector<8x128xf32> -> vector<8x128xf32>
    %209 = arith.index_cast %c0_i32_98 : i32 to index
    %c0_102 = arith.constant 0 : index
    %c0_103 = arith.constant 0 : index
    %210 = vector.load %arg12[%209, %c0_102, %c0_103] : memref<1x1x128xf32, #tpu.memory_space<vmem>>, vector<1x1x128xf32>
    %211 = vector.shape_cast %210 : vector<1x1x128xf32> to vector<1x128xf32>
    %212 = vector.broadcast %211 : vector<1x128xf32> to vector<8x128xf32>
    %213 = arith.addf %208, %212 : vector<8x128xf32>
    %cst_104 = arith.constant 5.000000e-01 : f32
    %214 = vector.broadcast %cst_104 : f32 to vector<8x128xf32>
    %215 = arith.mulf %214, %213 : vector<8x128xf32>
    %216 = arith.mulf %213, %213 : vector<8x128xf32>
    %217 = arith.mulf %216, %213 : vector<8x128xf32>
    %cst_105 = arith.constant 4.471500e-02 : f32
    %218 = vector.broadcast %cst_105 : f32 to vector<8x128xf32>
    %219 = arith.mulf %218, %217 : vector<8x128xf32>
    %220 = arith.addf %213, %219 : vector<8x128xf32>
    %cst_106 = arith.constant 0.797884583 : f32
    %221 = vector.broadcast %cst_106 : f32 to vector<8x128xf32>
    %222 = arith.mulf %221, %220 : vector<8x128xf32>
    %223 = math.tanh %222 : vector<8x128xf32>
    %cst_107 = arith.constant 1.000000e+00 : f32
    %224 = vector.broadcast %cst_107 : f32 to vector<8x128xf32>
    %225 = arith.addf %224, %223 : vector<8x128xf32>
    %226 = arith.mulf %215, %225 : vector<8x128xf32>
    %c0_108 = arith.constant 0 : index
    %c0_109 = arith.constant 0 : index
    %227 = vector.load %arg15[%c0_108, %c0_109] : memref<8x32xf32, #tpu.memory_space<vmem>>, vector<8x32xf32>
    %228 = arith.truncf %226 : vector<8x128xf32> to vector<8x128xbf16>
    %229 = arith.index_cast %c0_i32_98 : i32 to index
    %c0_110 = arith.constant 0 : index
    %c0_111 = arith.constant 0 : index
    %230 = vector.load %arg13[%229, %c0_110, %c0_111] : memref<1x128x32xbf16, #tpu.memory_space<vmem>>, vector<1x128x32xbf16>
    %231 = vector.shape_cast %230 : vector<1x128x32xbf16> to vector<128x32xbf16>
    %cst_112 = arith.constant dense<0.000000e+00> : vector<8x32xf32>
    %232 = tpu.matmul %228, %231, %cst_112 {dimension_numbers = #tpu.dot_dimension_numbers<[1], [0], [0], [1], [0, 0, 1, 1], [], []>} : vector<8x128xbf16>, vector<128x32xbf16>, vector<8x32xf32> -> vector<8x32xf32>
    %233 = arith.addf %227, %232 : vector<8x32xf32>
    %c0_113 = arith.constant 0 : index
    %c0_114 = arith.constant 0 : index
    %234 = vector.load %arg15[%c0_113, %c0_114] : memref<8x32xf32, #tpu.memory_space<vmem>>, vector<8x32xf32>
    tpu.vector_store %arg15[%c0_113, %c0_114], %233 {strides = array<i32>} : memref<8x32xf32, #tpu.memory_space<vmem>>, vector<8x32xf32>,
    %c1_i32_115 = arith.constant 1 : i32
    return
  }
  func.func @transform_0(%arg0: i32) -> (i32, i32) {
    %c0_i32 = arith.constant 0 : i32
    %c0_i32_0 = arith.constant 0 : i32
    return %arg0, %c0_i32 : i32, i32
  }
  func.func @transform_1(%arg0: i32) -> (i32, i32) {
    %c0_i32 = arith.constant 0 : i32
    %c0_i32_0 = arith.constant 0 : i32
    %c0_i32_1 = arith.constant 0 : i32
    return %c0_i32, %c0_i32_0 : i32, i32
  }
  func.func @transform_2(%arg0: i32) -> (i32, i32) {
    %c0_i32 = arith.constant 0 : i32
    %c0_i32_0 = arith.constant 0 : i32
    %c0_i32_1 = arith.constant 0 : i32
    return %c0_i32, %c0_i32_0 : i32, i32
  }
  func.func @transform_3(%arg0: i32) -> (i32, i32) {
    %c0_i32 = arith.constant 0 : i32
    %c0_i32_0 = arith.constant 0 : i32
    %c0_i32_1 = arith.constant 0 : i32
    return %c0_i32, %c0_i32_0 : i32, i32
  }
  func.func @transform_4(%arg0: i32) -> (i32, i32) {
    %c0_i32 = arith.constant 0 : i32
    %c0_i32_0 = arith.constant 0 : i32
    %c0_i32_1 = arith.constant 0 : i32
    return %c0_i32, %c0_i32_0 : i32, i32
  }
  func.func @transform_5(%arg0: i32) -> (i32, i32) {
    %c0_i32 = arith.constant 0 : i32
    %c0_i32_0 = arith.constant 0 : i32
    %c0_i32_1 = arith.constant 0 : i32
    return %c0_i32, %c0_i32_0 : i32, i32
  }
  func.func @transform_6(%arg0: i32) -> (i32, i32) {
    %c0_i32 = arith.constant 0 : i32
    %c0_i32_0 = arith.constant 0 : i32
    %c0_i32_1 = arith.constant 0 : i32
    return %c0_i32, %c0_i32_0 : i32, i32
  }
  func.func @transform_7(%arg0: i32) -> (i32, i32) {
    %c0_i32 = arith.constant 0 : i32
    %c0_i32_0 = arith.constant 0 : i32
    %c0_i32_1 = arith.constant 0 : i32
    return %c0_i32, %c0_i32_0 : i32, i32
  }
  func.func @transform_8(%arg0: i32) -> (i32, i32) {
    %c0_i32 = arith.constant 0 : i32
    %c0_i32_0 = arith.constant 0 : i32
    %c0_i32_1 = arith.constant 0 : i32
    return %c0_i32, %c0_i32_0 : i32, i32
  }
  func.func @transform_9(%arg0: i32) -> (i32, i32) {
    %c0_i32 = arith.constant 0 : i32
    %c0_i32_0 = arith.constant 0 : i32
    %c0_i32_1 = arith.constant 0 : i32
    return %c0_i32, %c0_i32_0 : i32, i32
  }
  func.func @transform_10(%arg0: i32) -> (i32, i32, i32) {
    %c0_i32 = arith.constant 0 : i32
    %c0_i32_0 = arith.constant 0 : i32
    %c0_i32_1 = arith.constant 0 : i32
    %c0_i32_2 = arith.constant 0 : i32
    return %c0_i32, %c0_i32_0, %c0_i32_1 : i32, i32, i32
  }
  func.func @transform_11(%arg0: i32) -> (i32, i32, i32) {
    %c0_i32 = arith.constant 0 : i32
    %c0_i32_0 = arith.constant 0 : i32
    %c0_i32_1 = arith.constant 0 : i32
    %c0_i32_2 = arith.constant 0 : i32
    return %c0_i32, %c0_i32_0, %c0_i32_1 : i32, i32, i32
  }
  func.func @transform_12(%arg0: i32) -> (i32, i32, i32) {
    %c0_i32 = arith.constant 0 : i32
    %c0_i32_0 = arith.constant 0 : i32
    %c0_i32_1 = arith.constant 0 : i32
    %c0_i32_2 = arith.constant 0 : i32
    return %c0_i32, %c0_i32_0, %c0_i32_1 : i32, i32, i32
  }
  func.func @transform_13(%arg0: i32) -> (i32, i32) {
    %c0_i32 = arith.constant 0 : i32
    %c0_i32_0 = arith.constant 0 : i32
    %c0_i32_1 = arith.constant 0 : i32
    return %c0_i32, %c0_i32_0 : i32, i32
  }
  func.func @transform_14(%arg0: i32) -> (i32, i32) {
    %c0_i32 = arith.constant 0 : i32
    %c0_i32_0 = arith.constant 0 : i32
    return %arg0, %c0_i32 : i32, i32
  }
}

</mosaic_0001>

<bundles_post_ra>
// kernel: tpu_custom_call.1
= control target key start
LH: loop header
LB: loop body
LE: loop exit
PB: predicated region body
PF: predicated region fallthrough
CT: control target
= control target key end

     0   :  { %s2597_s0 = inlined_call_operand.vmem [shape: f32[16,32], index: 0, kind: input, shape index: {}]   ;;  %s2598_s1 = inlined_call_operand.vmem [shape: f32[1,32], index: 1, kind: input, shape index: {}]   ;;  %s2599_s2 = inlined_call_operand.vmem [shape: f32[1,32], index: 2, kind: input, shape index: {}]   ;;  %s2600_s3 = inlined_call_operand.vmem [shape: bf16[32,32], index: 3, kind: input, shape index: {}]   ;;  %s2601_s4 = inlined_call_operand.vmem [shape: bf16[32,32], index: 4, kind: input, shape index: {}]   ;;  %s2602_s5 = inlined_call_operand.vmem [shape: bf16[32,32], index: 5, kind: input, shape index: {}]   ;;  %s2603_s6 = inlined_call_operand.vmem [shape: bf16[32,32], index: 6, kind: input, shape index: {}]   ;;  %s2604_s7 = inlined_call_operand.hbm [shape: f32[1,32], index: 7, kind: input, shape index: {}]   ;;  %s2605_s8 = inlined_call_operand.hbm [shape: f32[1,32], index: 8, kind: input, shape index: {}]   ;;  %s2606_s9 = inlined_call_operand.hbm [shape: f32[1,32], index: 9, kind: input, shape index: {}]   ;;  %s2607_s10 = inlined_call_operand.vmem [shape: bf16[1,32,128], index: 10, kind: input, shape index: {}]   ;;  %s2608_s11 = inlined_call_operand.vmem [shape: f32[1,1,128], index: 11, kind: input, shape index: {}]   ;;  %s2609_s12 = inlined_call_operand.vmem [shape: bf16[1,128,32], index: 12, kind: input, shape index: {}]   ;;  %s2610_s13 = inlined_call_operand.vmem [shape: f32[1,32], index: 13, kind: input, shape index: {}]   ;;  %s2611_s14 = inlined_call_operand.hbm [shape: f32[16,32], index: 14, kind: output, shape index: {}]  }
   0x1   :  { %2624 = sst [smem:[#allocation23_spill]] %s2611_s14 }
   0x2   :  { %19 = vsyncpa [#allocation7], 0 }
   0x3   :  { %20 = vsyncpa [#allocation10], 0 }
   0x4   :  { %21 = vsyncpa [#allocation8], 0 }
   0x5   :  { %23 = vsyncpa [#allocation8 + $0x1], 0  ;;  %s2212_s29 = smov 0   ;;  %s2214_s30 = smov 0  }
   0x6   :  { %s2216_s15 = smov 0   ;;  %s2218_s16 = smov 0  }
   0x7 LB: > { %2625 = sst [smem:[#allocation16_spill]] %s2111_s29  ;;  %s2233_s17 = sadd.s32 4294967295, %s2123_s16   ;;  %s2123_s16 = sphi %s2218_s16, %s2649_s16   ;;  %s2119_s15 = sphi %s2216_s15, %s2651_s15   ;;  %s2115_s30 = sphi %s2214_s30, %s2653_s30   ;;  %s2111_s29 = sphi %s2212_s29, %s2652_s29  }
   0x8   : > { %2626 = sst [smem:[#allocation17_spill]] %s2119_s15  ;;  %s1625_s18 = sadd.s32 4294967294, %s2123_s16  }
   0x9   : > { %2627 = sst [smem:[#allocation18_spill]] %s2123_s16  ;;  %s2237_s19 = sadd.s32 1, %s2123_s16  }
   0xa   : > { %2628 = sst [smem:[#allocation19_spill]] %s2237_s19  ;;  %s335_s20 = sadd.s32 1, %s2119_s15 }
   0xb   : > { %s332_s21 = ssub.s32 %s2123_s16, %s2237_s19  ;;  %p345_p0 = scmp.ne.s32.totalorder %s2119_s15, %s2115_s30 }
   0xc   : > { %p333_p1 = scmp.eq.s32.totalorder %s332_s21, 0  ;;  %p346_p2 = scmp.eq.s32.totalorder %s2233_s17, 1 }
   0xd   : > { %p351_p3 = scmp.ne.s32.totalorder %s2115_s30, %s2111_s29  ;;  %p352_p4 = scmp.eq.s32.totalorder %s1625_s18, 1 }
   0xe   : > { %s2248_s22 = scalar_select %p333_p1, %s2119_s15, %s335_s20  }
   0xf   : > { %p2250_p5 = por %p346_p2, %p345_p0  ;;  %p2254_p6 = por %p352_p4, %p351_p3 }
  0x10   : > { %2629 = sst [smem:[#allocation20_spill]] %s2248_s22  ;;  %p1626_p7 = scmp.ge.s32.totalorder %s2123_s16, 1 }
  0x11   : > { %s2630_s23 = scalar_select %p2250_p5, 1, 0 }
  0x12   : > { %s2632_s24 = scalar_select %p2254_p6, 1, 0 }
  0x13   : > { %2631 = sst [smem:[#allocation21_spill]] %s2630_s23  ;;  %p359_p8 = scmp.lt.s32.totalorder %s2123_s16, 3 }
  0x14   : > { %2633 = sst [smem:[#allocation22_spill]] %s2632_s24  ;;  %p2618_p9 = scmp.eq.s32.totalorder %s2233_s17, 0 }
  0x15   : > { %p2261_p10 = pnand %p1626_p7, %p359_p8  ;;  %s2125_s26 = smov [#allocation9]  }
  0x16   : > { %s401_s27 = sshll.u32 %s2125_s26, 4  ;;  %s2126_s28 = smov [#allocation6]   ;;  %s402_s27 = int_to_ptr.vmem [resolvable:$true] %s401_s27 }
  0x17   : > { %s2634_s25 = scalar_select %p2261_p10, 1, 0 }
  0x18   : > { %p1856_p11 = pneg %p2261_p10  ;;  %s390_s18 = sshll.u32 %s2126_s28, 4  ;;  %s2273_s18 = int_to_ptr.vmem [resolvable:$true] %s390_s18 }
  0x19   : > { %s2127_s21 = smov [#allocation11]   ;;  %s1969_s26 = scalar_lea.hbm %s2605_s8, 16 }
  0x1a   : > { %p2269_p12 = pnand %p2618_p9, %p1856_p11  ;;  %s412_s22 = sshll.u32 %s2127_s21, 4  ;;  %s2275_s22 = int_to_ptr.vmem [resolvable:$true] %s412_s22 }
  0x1b   : > { %p1970_p13 = scmp.ne.s32.totalorder %s2605_s8, %s1969_s26  ;;  %p1976_p3 = scmp.lt.u32.totalorder %s1969_s26, %s2605_s8 }
  0x1c   : > { %p2285_p0 = pneg %p2269_p12 }
  0x1e   : > { %p1972_p1 = pnand %p2285_p0, %p1970_p13 }
  0x20   : > { %p1973_p2 = pneg %p1972_p1 }
  0x22   : > { %p1978_p4 = pnand %p1976_p3, %p1973_p2 }
  0x24   : > { %1981 = shalt.err (!%p1978_p4)
}
  0x25   : > { %s1982_s15 = scalar_lea.vmem %s402_s27, 16  ;;  %s1989_s29 = scalar_lea.vmem %s402_s27, 32 }
  0x26   : > { %p1983_p7 = scmp.ne.s32.totalorder %s402_s27, %s1982_s15  ;;  %p1990_p9 = scmp.lt.s32.totalorder %s402_s27, %s402_s27 }
  0x27   : > { %p1991_p6 = scmp.lt.s32.totalorder %s1989_s29, %s1982_s15 }
  0x28   : > { %p1985_p8 = pnand %p1983_p7, %p2285_p0 }
  0x29   : > { %p1992_p5 = por %p1991_p6, %p1990_p9 }
  0x2a   : > { %p1986_p11 = pneg %p1985_p8 }
  0x2c   : > { %p1993_p10 = pnand %p1992_p5, %p1986_p11 }
  0x2e   : > { %1996 = shalt.err (!%p1993_p10)
}
  0x2f   : > { %1862 = dma.hbm_to_vmem [thread:$0]  (!%p2269_p12), %s2605_s8, 16, %s402_s27, [#allocation10]  }
  0x30   : > { %s1997_s21 = scalar_lea.hbm %s2604_s7, 16 }
  0x31   : > { %p1998_p13 = scmp.ne.s32.totalorder %s2604_s7, %s1997_s21  ;;  %p2004_p5 = scmp.lt.u32.totalorder %s1997_s21, %s2604_s7 }
  0x33   : > { %p2000_p1 = pnand %p1998_p13, %p2285_p0 }
  0x35   : > { %p2001_p6 = pneg %p2000_p1 }
  0x37   : > { %p2006_p9 = pnand %p2004_p5, %p2001_p6 }
  0x39   : > { %2009 = shalt.err (!%p2006_p9)
}
  0x3a   : > { %s2010_s27 = scalar_lea.vmem %s2273_s18, 16  ;;  %s2017_s14 = scalar_lea.vmem %s2273_s18, 32 }
  0x3b   : > { %p2011_p10 = scmp.ne.s32.totalorder %s2273_s18, %s2010_s27  ;;  %p2018_p4 = scmp.lt.s32.totalorder %s2273_s18, %s2273_s18 }
  0x3c   : > { %p2019_p7 = scmp.lt.s32.totalorder %s2017_s14, %s2010_s27 }
  0x3d   : > { %p2013_p2 = pnand %p2011_p10, %p2285_p0 }
  0x3e   : > { %p2020_p8 = por %p2019_p7, %p2018_p4 }
  0x3f   : > { %p2014_p3 = pneg %p2013_p2 }
  0x41   : > { %p2021_p11 = pnand %p2020_p8, %p2014_p3 }
  0x43   : > { %2024 = shalt.err (!%p2021_p11)
}
  0x44   : > { %1859 = dma.hbm_to_vmem [thread:$0]  (!%p2269_p12), %s2604_s7, 16, %s2273_s18, [#allocation7]  }
  0x45   : > { %s2025_s26 = scalar_lea.hbm %s2606_s9, 16 }
  0x46   : > { %p2026_p13 = scmp.ne.s32.totalorder %s2606_s9, %s2025_s26  ;;  %p2032_p5 = scmp.lt.u32.totalorder %s2025_s26, %s2606_s9 }
  0x48   : > { %p2028_p1 = pnand %p2026_p13, %p2285_p0 }
  0x4a   : > { %p2029_p6 = pneg %p2028_p1 }
  0x4c   : > { %p2034_p9 = pnand %p2032_p5, %p2029_p6 }
  0x4e   : > { %2037 = shalt.err (!%p2034_p9)
}
  0x4f   : > { %s2038_s18 = scalar_lea.vmem %s2275_s22, 16  ;;  %s2045_s14 = scalar_lea.vmem %s2275_s22, 32 }
  0x50   : > { %p2039_p10 = scmp.ne.s32.totalorder %s2275_s22, %s2038_s18  ;;  %p2046_p4 = scmp.lt.s32.totalorder %s2275_s22, %s2275_s22 }
  0x51   : > { %p2047_p7 = scmp.lt.s32.totalorder %s2045_s14, %s2038_s18 }
  0x52   : > { %p2041_p2 = pnand %p2039_p10, %p2285_p0 }
  0x53   : > { %p2048_p8 = por %p2047_p7, %p2046_p4 }
  0x54   : > { %p2042_p3 = pneg %p2041_p2 }
  0x56   : > { %p2049_p11 = pnand %p2048_p8, %p2042_p3 }
  0x58   : > { %2052 = shalt.err (!%p2049_p11)
}
  0x59   : > { %1865 = dma.hbm_to_vmem [thread:$0]  (!%p2269_p12), %s2606_s9, 16, %s2275_s22, [#allocation10]  }
  0x5a   : > { %p2637_p13 = scmp.ne.s32.totalorder %s2634_s25, 0 }
  0x5b   : > { %p2638_p0 = scmp.eq.s32.totalorder (!%p2637_p13), %s2233_s17, 0 }
  0x5c   : > { %444 = sbr.rel (%p2637_p13) target bundleno = 2701 (0xa8d), region = 76 }
  0x63   : > { %2098 = dma.done.wait (%p2638_p0), [#allocation7], 16   ;;  %p2639_p1 = pmov %p2638_p0 }
  0x64   : > { %p2640_p6 = pmov %p2638_p0 }
  0x65   : > { %2100 = vsyncadd (%p2639_p1), [#allocation7], 4294967280 }
  0x66   : > { %2102 = dma.done.wait (%p2640_p6), [#allocation10], 32   ;;  %p2641_p5 = pmov %p2638_p0 }
  0x67   : > { %p497_p9 = scmp.lt.s32.totalorder %s2233_s17, 1  ;;  %vm505_vm0 = vcmask 261120   ;;  %v1920_v7 = vld [vmem:[%s2600_s3] sm:$0xff]   ;;  %v2128_v8 = vmov 0.0   ;;  %vm2129_vm1 = vmmov 0   ;;  %v1921_v9 = vld [vmem:[%s2600_s3 + $0x8] sm:$0xff]   ;;  %v713_v59 = vlaneseq }
  0x68   : > { %2104 = vsyncadd (%p2641_p5), [#allocation10], 4294967264  ;;  %1734 = vmatprep.subr.bf16.mxu0 %v2128_v8  ;;  %1738 = vmatprep.mubr.msk.bf16.mxu0 %vm2129_vm1, %v2128_v8  ;;  %v1637_v14 = vld [vmem:[%s2598_s1] ss:$0 sm:$0xff]  ;;  %v1923_v21 = vld [vmem:[%s2601_s4 + $0x8] sm:$0xff]   ;;  %vm595_vm2 = vcmask 257024  }
  0x69   : > { %s498_s20 = scalar_select %p497_p9, %s2233_s17, 1  ;;  %1735 = vmatpush3.bf16.msra.mxu0 %v1920_v7  ;;  %1758 = vmatprep.subr.bf16.mxu1 %v2128_v8  ;;  %v1638_v16 = vld [vmem:[%s2599_s2] ss:$0 sm:$0xff]  ;;  %v1925_v23 = vld [vmem:[%s2602_s5 + $0x8] sm:$0xff]   ;;  %vm721_vm3 = vcmask 64512   ;;  %vm785_vm4 = vcmask 1043456  }
  0x6a   : > { %1736 = vmatprep.subr.bf16.mxu0 %v2128_v8  ;;  %1760 = vmatprep.mubr.msk.bf16.mxu1 %vm2129_vm1, %v2128_v8  ;;  %v1922_v19 = vld [vmem:[%s2601_s4] sm:$0xff]   ;;  %s2130_s26 = smov 112   ;;  %s2131_s21 = smov 120   ;;  %v714_v60 = vshrl.u32 %v713_v59, 7  ;;  %v716_v61 = vand.u32 127, %v713_v59  ;;  %vm830_vm6 = vcmask 60416  }
  0x6b   : > { %s1636_s22 = sshll.u32 %s498_s20, 3  ;;  %v1924_v22 = vld [vmem:[%s2602_s5] sm:$0xff]   ;;  %s2132_s15 = smov 104   ;;  %vm963_vm7 = vcmask 126016   ;;  %vm1096_vm8 = vcmask 191616   ;;  %vm1229_vm9 = vcmask 257216  }
  0x6c   : > { %s500_s24 = scalar_lea.vmem %s2597_s0, %s1636_s22  ;;  %vm717_vm5 = vcmp.gt.s32.totalorder %v716_v61, %v714_v60  ;;  %s2133_s29 = smov 8  }
  0x6d   : > { %v2364_v0 = vld [vmem:[%s500_s24] sm:$0xff]  ;;  %1737 = vmatpush3.bf16.msra.mxu0 %v1921_v9  ;;  %s2134_s27 = smov 16   ;;  %s2135_s20 = smov 24  }
  0x6e   : > { %v506_v1 = vsel %vm505_vm0, %v2364_v0, 0.0  ;;  %1742 = vmatprep.subr.bf16.mxu0 %v2128_v8  ;;  %s494_s22 = sand.u32 1, %s2115_s30  }
  0x6f   : > { %507 = vadd.xlane.f32.xlu0 %v506_v1  ;;  %s1635_s28 = sshll.u32 %s494_s22, 3 }
  0x70   : > { %s2498_s16 = scalar_lea.vmem [#allocation12], %s1635_s28  ;;  %s1688_s28 = sshll.u32 %s2233_s17, 7 }
  0x71   : > { %s1535_s25 = sshll.u32 %s2498_s16, 4  ;;  %s1522_s17 = scalar_lea.sflag [#allocation8], %s494_s22  ;;  %s2553_s25 = int_to_ptr.vmem [resolvable:$true] %s1535_s25 }
  0xfc   : > { %v508_v2 = vpop.xlane.xlu0 %507 }
  0xfd   : > { %v510_v3 = vmul.f32 0.03125, %v508_v2 }
  0xff   : > { %v511_v4 = vsub.f32 %v2364_v0, %v510_v3 }
 0x101   : > { %v512_v5 = vmul.f32 %v511_v4, %v511_v4 }
 0x103   : > { %v513_v6 = vsel %vm505_vm0, %v512_v5, 0.0 }
 0x104   : > { %514 = vadd.xlane.f32.xlu0 %v513_v6 }
 0x191   : > { %v515_v10 = vpop.xlane.xlu0 %514 }
 0x192   : > { %v516_v11 = vmul.f32 0.03125, %v515_v10 }
 0x194   : > { %v517_v12 = vadd.f32 1e-05, %v516_v11 }
 0x196   : > { %1947 = vrsqrt.f32 %v517_v12 }
 0x1a0   : > { %v1948_v13 = vpop.eup %1947 }
 0x1a1   : > { %v519_v15 = vmul.f32 %v1948_v13, %v511_v4 }
 0x1a3   : > { %v526_v17 = vmul.f32 %v1637_v14, %v519_v15 }
 0x1a5   : > { %v533_v18 = vadd.f32 %v1638_v16, %v526_v17 }
 0x1a7   : > { %v534_v20 = vpack.c.bf16 %v533_v18, %v533_v18 }
 0x1a9   : > { %1739 = vmatmul.mubr.msk.bf16.vlgmr.msra.gmra.mrb[0].mxu0 %vm505_vm0, %v534_v20 }
 0x1aa   : > { %1743 = vmatpush3.bf16.msra.mxu0 %v1922_v19  ;;  %1746 = vmatprep.mubr.msk.bf16.mxu0 %vm2129_vm1, %v2128_v8 }
 0x1ab   : > { %1744 = vmatprep.subr.bf16.mxu0 %v2128_v8 }
 0x1ae   : > { %1745 = vmatpush3.bf16.msra.mxu0 %v1923_v21 }
 0x1af   : > { %1750 = vmatprep.subr.bf16.mxu0 %v2128_v8 }
 0x1b1   : > { %1747 = vmatmul.mubr.msk.bf16.vlgmr.msra.gmra.mrb[4].mxu0 %vm505_vm0, %v534_v20 }
 0x1b2   : > { %1751 = vmatpush3.bf16.msra.mxu0 %v1924_v22  ;;  %1754 = vmatprep.mubr.msk.bf16.mxu0 %vm2129_vm1, %v2128_v8 }
 0x1b3   : > { %1752 = vmatprep.subr.bf16.mxu0 %v2128_v8 }
 0x1b6   : > { %1753 = vmatpush3.bf16.msra.mxu0 %v1925_v23 }
 0x1b7   : > { %1764 = vmatprep.subr.bf16.mxu0 %v2128_v8 }
 0x1b9   : > { %1755 = vmatmul.mubr.msk.bf16.vlgmr.msra.gmra.mrb[8].mxu0 %vm505_vm0, %v534_v20 }
 0x1ba   : > { %1766 = vmatprep.mubr.msk.bf16.mxu0 %vm2129_vm1, %v2128_v8 }
 0x27c   : > { %v588_v24 = vpop.f32.mrb[0].mxu0 }
 0x27d   : > { %v594_v25 = vpack.c.bf16 %v588_v24, %v588_v24  ;;  %v1740_v26 = vpop.f32.mrb[1].mxu0 }
 0x27e   : > { %v591_v27 = vpop.f32.mrb[2].mxu0 }
 0x27f   : > { %596 = vst.msk [vmem:[#allocation2] sm:$0xf] %vm595_vm2, %v594_v25  ;;  %v1741_v28 = vpop.f32.mrb[3].mxu0 }
 0x284   : > { %v647_v29 = vpop.f32.mrb[4].mxu0 }
 0x285   : > { %v653_v30 = vpack.c.bf16 %v647_v29, %v647_v29  ;;  %v1748_v31 = vpop.f32.mrb[5].mxu0 }
 0x286   : > { %v650_v32 = vpop.f32.mrb[6].mxu0  ;;  %v1928_v43 = vld [vmem:[#allocation2] ss:$0 sps:$4 sm:$0xff]  }
 0x287   : > { %654 = vst.msk [vmem:[#allocation3] sm:$0xf] %vm595_vm2, %v653_v30  ;;  %v1749_v33 = vpop.f32.mrb[7].mxu0  ;;  %v718_v44 = vld [vmem:[#allocation2] sm:$0xf] }
 0x288   : > { %v1929_v47 = vld [vmem:[#allocation2] ss:$0 sps:$4 sm:$0xff]  }
 0x289   : > { %v1931_v49 = vld [vmem:[#allocation2] ss:$0 sps:$4 sm:$0xff]  }
 0x28c   : > { %v705_v34 = vpop.f32.mrb[8].mxu0 }
 0x28d   : > { %v711_v35 = vpack.c.bf16 %v705_v34, %v705_v34  ;;  %v1756_v36 = vpop.f32.mrb[9].mxu0 }
 0x28e   : > { %v708_v37 = vpop.f32.mrb[10].mxu0  ;;  %v719_v38 = vld [vmem:[#allocation3] sm:$0xf] }
 0x28f   : > { %712 = vst.msk [vmem:[#allocation4] sm:$0xf] %vm595_vm2, %v711_v35  ;;  %v1757_v39 = vpop.f32.mrb[11].mxu0  ;;  %v726_v40 = vsel %vm721_vm3, %v719_v38, 0  ;;  %v1926_v41 = vld [vmem:[#allocation3] ss:$0 sps:$4 sm:$0xff]  }
 0x290   : > { %1759 = vmatpush3.bf16.xpose.msra.mxu1 %v726_v40  ;;  %v1927_v42 = vld [vmem:[#allocation3] ss:$0 sps:$4 sm:$0xff]   ;;  %976 = vrot.lane.b32.xlu0 %v1926_v41, %s2130_s26 }
 0x291   : > { %1770 = vmatprep.subr.bf16.mxu1 %v2128_v8  ;;  %843 = vrot.lane.b32.xlu1 %v1927_v42, %s2131_s21  ;;  %v1930_v48 = vld [vmem:[#allocation3] ss:$0 sps:$4 sm:$0xff]  }
 0x295   : > { %838 = vrot.lane.b32.xlu1 %v1928_v43, %s2131_s21 }
 0x296   : > { %v720_v45 = vld [vmem:[#allocation4] sm:$0xf] }
 0x297   : > { %1761 = vmatmul.mubr.msk.bf16.vlgmr.msra.gmra.mrb[0].mxu1 %vm721_vm3, %v718_v44  ;;  %v787_v46 = vsel %vm785_vm4, %v720_v45, 0  ;;  %v1932_v43 = vld [vmem:[#allocation4] ss:$0 sps:$4 sm:$0xff]  }
 0x298   : > { %1765 = vmatpush3.bf16.msra.mxu0 %v787_v46  ;;  %1772 = vmatprep.mubr.msk.bf16.mxu1 %vm2129_vm1, %v2128_v8  ;;  %v1933_v46 = vld [vmem:[#allocation4] ss:$0 sps:$4 sm:$0xff]  }
 0x299   : > { %1776 = vmatprep.subr.bf16.mxu0 %v2128_v8  ;;  %971 = vrot.lane.b32.xlu1 %v1929_v47, %s2130_s26 }
 0x29d   : > { %1109 = vrot.lane.b32.xlu1 %v1930_v48, %s2132_s15 }
 0x2a1   : > { %1104 = vrot.lane.b32.xlu1 %v1931_v49, %s2132_s15 }
 0x302   : > { %v977_v53 = vpop.permute.xlu0 %976 }
 0x303   : > { %v844_v50 = vpop.permute.xlu1 %843  ;;  %v982_v55 = vsel %vm721_vm3, %v977_v53, 0 }
 0x304   : > { %v849_v51 = vsel %vm721_vm3, %v844_v50, 0 }
 0x305   : > { %1771 = vmatpush3.bf16.xpose.msra.mxu1 %v849_v51 }
 0x306   : > { %1782 = vmatprep.subr.bf16.mxu1 %v2128_v8 }
 0x307   : > { %v839_v52 = vpop.permute.xlu1 %838 }
 0x30b   : > { %v972_v54 = vpop.permute.xlu1 %971 }
 0x30c   : > { %1773 = vmatmul.mubr.msk.bf16.vlgmr.msra.gmra.mrb[4].mxu1 %vm721_vm3, %v839_v52 }
 0x30d   : > { %1783 = vmatpush3.bf16.xpose.msra.mxu1 %v982_v55  ;;  %1784 = vmatprep.mubr.msk.bf16.mxu1 %vm2129_vm1, %v2128_v8 }
 0x30e   : > { %1794 = vmatprep.subr.bf16.mxu1 %v2128_v8 }
 0x30f   : > { %v1110_v56 = vpop.permute.xlu1 %1109 }
 0x310   : > { %v1115_v57 = vsel %vm721_vm3, %v1110_v56, 0 }
 0x313   : > { %v1105_v58 = vpop.permute.xlu1 %1104 }
 0x314   : > { %1785 = vmatmul.mubr.msk.bf16.vlgmr.msra.gmra.mrb[8].mxu1 %vm721_vm3, %v972_v54  ;;  %v1934_v54 = vld [vmem:[#allocation4] ss:$0 sps:$4 sm:$0xff]  }
 0x315   : > { %1795 = vmatpush3.bf16.xpose.msra.mxu1 %v1115_v57  ;;  %1796 = vmatprep.mubr.msk.bf16.mxu1 %vm2129_vm1, %v2128_v8 }
 0x316   : > { %1806 = vmatprep.subr.bf16.mxu1 %v2128_v8 }
 0x31c   : > { %1797 = vmatmul.mubr.msk.bf16.vlgmr.msra.gmra.mrb[12].mxu1 %vm721_vm3, %v1105_v58 }
 0x31d   : > { %1810 = vmatprep.mubr.msk.bf16.mxu1 %vm2129_vm1, %v2128_v8 }
 0x36a   : > { %v762_v62 = vpop.f32.mrb[0].mxu1 }
 0x36b   : > { %v768_v63 = vmul.f32 0.35355338, %v762_v62  ;;  %v1762_v1 = vpop.f32.mrb[1].mxu1 }
 0x36c   : > { %v765_v2 = vpop.f32.mrb[2].mxu1 }
 0x36d   : > { %v1763_v3 = vpop.f32.mrb[3].mxu1  ;;  %v769_v4 = vsel %vm717_vm5, -1e+30, %v768_v63 }
 0x36e   : > { %v770_v5 = vsel %vm721_vm3, %v769_v4, -inf }
 0x36f   : > { %771 = vmax.xlane.f32.xlu1 %v770_v5 }
 0x3df   : > { %v885_v6 = vpop.f32.mrb[4].mxu1 }
 0x3e0   : > { %v891_v7 = vmul.f32 0.35355338, %v885_v6  ;;  %v1774_v9 = vpop.f32.mrb[5].mxu1 }
 0x3e1   : > { %v888_v10 = vpop.f32.mrb[6].mxu1 }
 0x3e2   : > { %v1775_v11 = vpop.f32.mrb[7].mxu1  ;;  %v892_v12 = vsel %vm717_vm5, -1e+30, %v891_v7 }
 0x3e3   : > { %v893_v13 = vsel %vm721_vm3, %v892_v12, -inf }
 0x3e4   : > { %894 = vmax.xlane.f32.xlu0 %v893_v13 }
 0x3e7   : > { %v1018_v14 = vpop.f32.mrb[8].mxu1 }
 0x3e8   : > { %v1024_v15 = vmul.f32 0.35355338, %v1018_v14  ;;  %v1786_v16 = vpop.f32.mrb[9].mxu1 }
 0x3e9   : > { %v1021_v17 = vpop.f32.mrb[10].mxu1 }
 0x3ea   : > { %v1787_v18 = vpop.f32.mrb[11].mxu1  ;;  %v1025_v19 = vsel %vm717_vm5, -1e+30, %v1024_v15 }
 0x3eb   : > { %v1026_v20 = vsel %vm721_vm3, %v1025_v19, -inf }
 0x3ec   : > { %1027 = vmax.xlane.f32.xlu1 %v1026_v20 }
 0x3ef   : > { %v1151_v21 = vpop.f32.mrb[12].mxu1 }
 0x3f0   : > { %v1157_v22 = vmul.f32 0.35355338, %v1151_v21  ;;  %v1798_v23 = vpop.f32.mrb[13].mxu1 }
 0x3f1   : > { %v1154_v24 = vpop.f32.mrb[14].mxu1 }
 0x3f2   : > { %v1799_v25 = vpop.f32.mrb[15].mxu1  ;;  %v1158_v26 = vsel %vm717_vm5, -1e+30, %v1157_v22 }
 0x3f3   : > { %v1159_v27 = vsel %vm721_vm3, %v1158_v26, -inf }
 0x3f4   : > { %1160 = vmax.xlane.f32.xlu1 %v1159_v27  ;;  %v1936_v27 = vld [vmem:[%s2603_s6 + $0x8] sm:$0xff]  }
 0x3fc   : > { %v772_v28 = vpop.xlane.xlu1 %771 }
 0x3fd   : > { %v773_v29 = vsub.f32 %v769_v4, %v772_v28 }
 0x3ff   : > { %v774_v30 = vmul.f32 1.442695, %v773_v29 }
 0x401   : > { %1949 = vpow2.f32 %v774_v30 }
 0x40b   : > { %v1950_v31 = vpop.eup %1949 }
 0x40c   : > { %v776_v32 = vsel %vm721_vm3, %v1950_v31, 0.0 }
 0x40d   : > { %777 = vadd.xlane.f32.xlu0 %v776_v32 }
 0x471   : > { %v895_v33 = vpop.xlane.xlu0 %894 }
 0x472   : > { %v896_v34 = vsub.f32 %v892_v12, %v895_v33 }
 0x474   : > { %v897_v35 = vmul.f32 1.442695, %v896_v34 }
 0x476   : > { %1951 = vpow2.f32 %v897_v35 }
 0x479   : > { %v1028_v36 = vpop.xlane.xlu1 %1027 }
 0x47a   : > { %v1029_v37 = vsub.f32 %v1025_v19, %v1028_v36 }
 0x47c   : > { %v1030_v38 = vmul.f32 1.442695, %v1029_v37  ;;  %v1668_v37 = vld [vmem:[#allocation6] ss:$0 sm:$0xff] }
 0x47e   : > { %1953 = vpow2.f32 %v1030_v38 }
 0x480   : > { %v1952_v39 = vpop.eup %1951 }
 0x481   : > { %v899_v40 = vsel %vm721_vm3, %v1952_v39, 0.0  ;;  %v1161_v45 = vpop.xlane.xlu1 %1160 }
 0x482   : > { %900 = vadd.xlane.f32.xlu1 %v899_v40  ;;  %v1162_v47 = vsub.f32 %v1158_v26, %v1161_v45  ;;  %v1935_v26 = vld [vmem:[%s2603_s6] sm:$0xff]  }
 0x483   : > { %1807 = vmatpush3.bf16.msra.mxu1 %v1935_v26 }
 0x484   : > { %v1163_v49 = vmul.f32 1.442695, %v1162_v47  ;;  %1808 = vmatprep.subr.bf16.mxu1 %v2128_v8 }
 0x487   : > { %1809 = vmatpush3.bf16.msra.mxu1 %v1936_v27 }
 0x488   : > { %v1954_v41 = vpop.eup %1953  ;;  %1822 = vmatprep.subr.bf16.mxu1 %v2128_v8 }
 0x489   : > { %v1032_v42 = vsel %vm721_vm3, %v1954_v41, 0.0 }
 0x48a   : > { %1033 = vadd.xlane.f32.xlu0 %v1032_v42 }
 0x493   : > { %1041 = vrot.lane.b32.xlu1 %v1932_v43, %s2130_s26 }
 0x49a   : > { %v778_v44 = vpop.xlane.xlu0 %777 }
 0x49b   : > { %1955 = vrcp.f32 %v778_v44 }
 0x49c   : > { %1957 = vpow2.f32 %v1163_v49 }
 0x4a0   : > { %908 = vrot.lane.b32.xlu0 %v1933_v46, %s2131_s21  ;;  %s2643_s21 = sld [smem:[#allocation23_spill]] }
 0x4a5   : > { %v1956_v48 = vpop.eup %1955 }
 0x4a6   : > { %v780_v50 = vmul.f32 %v1956_v48, %v1950_v31  ;;  %v1958_v52 = vpop.eup %1957 }
 0x4a7   : > { %v1165_v53 = vsel %vm721_vm3, %v1958_v52, 0.0 }
 0x4a8   : > { %v781_v51 = vpack.c.bf16 %v780_v50, %v780_v50 }
 0x4aa   : > { %1767 = vmatmul.mubr.msk.bf16.vlgmr.msra.gmra.mrb[12].mxu0 %vm721_vm3, %v781_v51 }
 0x4ab   : > { %1778 = vmatprep.mubr.msk.bf16.mxu0 %vm2129_vm1, %v2128_v8 }
 0x4b7   : > { %1166 = vadd.xlane.f32.xlu1 %v1165_v53  ;;  %v1939_v53 = vld [vmem:[%s2609_s12] sm:$0xff]  }
 0x4c8   : > { %1174 = vrot.lane.b32.xlu1 %v1934_v54, %s2132_s15  ;;  %s2551_s15 = scalar_lea.hbm %s2643_s21, %s1688_s28 }
 0x50f   : > { %v901_v55 = vpop.xlane.xlu1 %900 }
 0x510   : > { %1959 = vrcp.f32 %v901_v55 }
 0x513   : > { %v1042_v61 = vpop.permute.xlu1 %1041 }
 0x514   : > { %v1047_v63 = vsel %vm785_vm4, %v1042_v61, 0 }
 0x517   : > { %v1034_v56 = vpop.xlane.xlu0 %1033 }
 0x518   : > { %1961 = vrcp.f32 %v1034_v56 }
 0x51a   : > { %v1960_v57 = vpop.eup %1959 }
 0x51b   : > { %v903_v58 = vmul.f32 %v1960_v57, %v1952_v39  ;;  %v909_v59 = vpop.permute.xlu0 %908 }
 0x51c   : > { %v914_v60 = vsel %vm785_vm4, %v909_v59, 0 }
 0x51d   : > { %1777 = vmatpush3.bf16.msra.mxu0 %v914_v60  ;;  %v904_v62 = vpack.c.bf16 %v903_v58, %v903_v58  ;;  %v1672_v58 = vld [vmem:[#allocation9] ss:$0 sm:$0xff]  ;;  %v1673_v60 = vld [vmem:[#allocation11] ss:$0 sm:$0xff] }
 0x51e   : > { %1788 = vmatprep.subr.bf16.mxu0 %v2128_v8 }
 0x520   : > { %1779 = vmatmul.mubr.msk.bf16.vlgmr.msra.gmra.mrb[16].mxu0 %vm721_vm3, %v904_v62 }
 0x521   : > { %1789 = vmatpush3.bf16.msra.mxu0 %v1047_v63  ;;  %1790 = vmatprep.mubr.msk.bf16.mxu0 %vm2129_vm1, %v2128_v8 }
 0x522   : > { %v1962_v1 = vpop.eup %1961  ;;  %1800 = vmatprep.subr.bf16.mxu0 %v2128_v8 }
 0x523   : > { %v1036_v2 = vmul.f32 %v1962_v1, %v1954_v41  ;;  %v1674_v41 = vld [vmem:[%s2610_s13] ss:$0 sm:$0xff]  ;;  %v1940_v1 = vld [vmem:[%s2609_s12 + $0x8] sm:$0xff]  }
 0x525   : > { %v1037_v3 = vpack.c.bf16 %v1036_v2, %v1036_v2  ;;  %v1941_v2 = vld [vmem:[%s2609_s12 + $0x10] sm:$0xff]  }
 0x528   : > { %1791 = vmatmul.mubr.msk.bf16.vlgmr.msra.gmra.mrb[20].mxu0 %vm721_vm3, %v1037_v3  ;;  %v1942_v3 = vld [vmem:[%s2609_s12 + $0x18] sm:$0xff]  }
 0x529   : > { %1802 = vmatprep.mubr.msk.bf16.mxu0 %vm2129_vm1, %v2128_v8 }
 0x544   : > { %v1167_v4 = vpop.xlane.xlu1 %1166 }
 0x545   : > { %1963 = vrcp.f32 %v1167_v4  ;;  %v1943_v4 = vld [vmem:[%s2609_s12 + $0x20] sm:$0xff]  }
 0x548   : > { %v1175_v5 = vpop.permute.xlu1 %1174 }
 0x549   : > { %v1180_v6 = vsel %vm785_vm4, %v1175_v5, 0  ;;  %v1944_v5 = vld [vmem:[%s2609_s12 + $0x28] sm:$0xff]  }
 0x54a   : > { %1801 = vmatpush3.bf16.msra.mxu0 %v1180_v6  ;;  %v1945_v6 = vld [vmem:[%s2609_s12 + $0x30] sm:$0xff]  }
 0x54b   : > { %1814 = vmatprep.subr.bf16.mxu0 %v2128_v8 }
 0x54f   : > { %v1964_v7 = vpop.eup %1963 }
 0x550   : > { %v1169_v9 = vmul.f32 %v1964_v7, %v1958_v52  ;;  %v1938_v52 = vld [vmem:[%s2607_s10 + $0x8] sm:$0xff]   ;;  %v1946_v7 = vld [vmem:[%s2609_s12 + $0x38] sm:$0xff]  }
 0x552   : > { %v1170_v10 = vpack.c.bf16 %v1169_v9, %v1169_v9  ;;  %v1675_v9 = vld [vmem:[%s2608_s11] ss:$0 sm:$0xff] }
 0x554   : > { %1803 = vmatmul.mubr.msk.bf16.vlgmr.msra.gmra.mrb[24].mxu0 %vm721_vm3, %v1170_v10 }
 0x555   : > { %1818 = vmatprep.mubr.msk.bf16.mxu0 %vm2129_vm1, %v2128_v8 }
 0x57d   : > { %v823_v11 = vpop.f32.mrb[12].mxu0 }
 0x57e   : > { %v829_v12 = vpack.c.bf16 %v823_v11, %v823_v11  ;;  %v1768_v13 = vpop.f32.mrb[13].mxu0 }
 0x57f   : > { %v826_v14 = vpop.f32.mrb[14].mxu0 }
 0x580   : > { %831 = vst.msk [vmem:[#allocation5] sm:$0xf] %vm830_vm6, %v829_v12  ;;  %v1769_v15 = vpop.f32.mrb[15].mxu0 }
 0x5f3   : > { %v950_v16 = vpop.f32.mrb[16].mxu0 }
 0x5f4   : > { %v1691_v17 = vpack.c.bf16 %v950_v16, %v950_v16  ;;  %v1780_v18 = vpop.f32.mrb[17].mxu0 }
 0x5f5   : > { %v953_v19 = vpop.f32.mrb[18].mxu0 }
 0x5f6   : > { %960 = vrot.lane.b32.xlu0 %v1691_v17, %s2133_s29  ;;  %v1781_v20 = vpop.f32.mrb[19].mxu0  ;;  %s2053_s29 = scalar_lea.vmem %s2553_s25, 128 }
 0x5f7   : > { %p2054_p12 = scmp.ne.s32.totalorder %s2553_s25, %s2053_s29 }
 0x5fb   : > { %v1083_v21 = vpop.f32.mrb[20].mxu0 }
 0x5fc   : > { %v1692_v22 = vpack.c.bf16 %v1083_v21, %v1083_v21  ;;  %v1792_v23 = vpop.f32.mrb[21].mxu0 }
 0x5fd   : > { %v1086_v24 = vpop.f32.mrb[22].mxu0 }
 0x5fe   : > { %1093 = vrot.lane.b32.xlu1 %v1692_v22, %s2134_s27  ;;  %v1793_v25 = vpop.f32.mrb[23].mxu0  ;;  %s2136_s27 = smov [#allocation12]  }
 0x5ff   : > { %s2057_s18 = sshll.u32 %s2136_s27, 4  ;;  %s2058_s18 = int_to_ptr.vmem [resolvable:$false] %s2057_s18 }
 0x600   : > { %s2059_s14 = scalar_lea.vmem %s2058_s18, 256  ;;  %p2060_p4 = scmp.lt.s32.totalorder %s2553_s25, %s2058_s18 }
 0x601   : > { %p2061_p7 = scmp.lt.s32.totalorder %s2059_s14, %s2053_s29 }
 0x603   : > { %p2062_p8 = por %p2061_p7, %p2060_p4 }
 0x627   : > { %v1216_v28 = vpop.f32.mrb[24].mxu0 }
 0x628   : > { %v1693_v29 = vpack.c.bf16 %v1216_v28, %v1216_v28  ;;  %v1804_v30 = vpop.f32.mrb[25].mxu0 }
 0x629   : > { %v1219_v31 = vpop.f32.mrb[26].mxu0 }
 0x62a   : > { %1226 = vrot.lane.b32.xlu0 %v1693_v29, %s2135_s20  ;;  %v1805_v32 = vpop.f32.mrb[27].mxu0  ;;  %s2642_s20 = sld [smem:[#allocation21_spill]] }
 0x630   : > { %p2644_p10 = scmp.ne.s32.totalorder %s2642_s20, 0 }
 0x632   : > { %p2055_p2 = pnand %p2054_p12, %p2644_p10 }
 0x634   : > { %p2056_p3 = pneg %p2055_p2 }
 0x636   : > { %p2063_p11 = pnand %p2062_p8, %p2056_p3 }
 0x668   : > { %v961_v33 = vpop.permute.xlu0 %960 }
 0x669   : > { %964 = vst.msk [vmem:[#allocation5] sm:$0xf] %vm963_vm7, %v961_v33 }
 0x670   : > { %v1094_v34 = vpop.permute.xlu1 %1093 }
 0x671   : > { %1097 = vst.msk [vmem:[#allocation5] sm:$0xf] %vm1096_vm8, %v1094_v34 }
 0x69c   : > { %v1227_v35 = vpop.permute.xlu0 %1226 }
 0x69d   : > { %1230 = vst.msk [vmem:[#allocation5] sm:$0xf] %vm1229_vm9, %v1227_v35 }
 0x6a4   : > { %v1231_v36 = vld [vmem:[#allocation5] sm:$0xf] }
 0x6a5   : > { %1811 = vmatmul.mubr.msk.bf16.vlgmr.msra.gmra.mrb[16].mxu1 %vm505_vm0, %v1231_v36 }
 0x6a6   : > { %1838 = vmatprep.mubr.msk.bf16.mxu1 %vm2129_vm1, %v2128_v8  ;;  %1823 = vmatpush3.bf16.msra.mxu1 %v1939_v53 }
 0x6a7   : > { %1824 = vmatprep.subr.bf16.mxu1 %v2128_v8 }
 0x6aa   : > { %1825 = vmatpush3.bf16.msra.mxu1 %v1940_v1 }
 0x6ab   : > { %1826 = vmatprep.subr.bf16.mxu1 %v2128_v8 }
 0x6ae   : > { %1827 = vmatpush3.bf16.msra.mxu1 %v1941_v2 }
 0x6af   : > { %1828 = vmatprep.subr.bf16.mxu1 %v2128_v8 }
 0x6b2   : > { %1829 = vmatpush3.bf16.msra.mxu1 %v1942_v3 }
 0x6b3   : > { %1830 = vmatprep.subr.bf16.mxu1 %v2128_v8 }
 0x6b6   : > { %1831 = vmatpush3.bf16.msra.mxu1 %v1943_v4 }
 0x6b7   : > { %1832 = vmatprep.subr.bf16.mxu1 %v2128_v8 }
 0x6ba   : > { %1833 = vmatpush3.bf16.msra.mxu1 %v1944_v5 }
 0x6bb   : > { %1834 = vmatprep.subr.bf16.mxu1 %v2128_v8 }
 0x6be   : > { %1835 = vmatpush3.bf16.msra.mxu1 %v1945_v6 }
 0x6bf   : > { %1836 = vmatprep.subr.bf16.mxu1 %v2128_v8 }
 0x6c2   : > { %1837 = vmatpush3.bf16.msra.mxu1 %v1946_v7 }
 0x778   : > { %v1292_v38 = vpop.f32.mrb[16].mxu1 }
 0x779   : > { %v1293_v39 = vadd.f32 %v1668_v37, %v1292_v38  ;;  %v1812_v40 = vpop.f32.mrb[17].mxu1 }
 0x77a   : > { %v1295_v42 = vpop.f32.mrb[18].mxu1 }
 0x77b   : > { %v1298_v43 = vadd.f32 %v1293_v39, %v2364_v0  ;;  %v1813_v44 = vpop.f32.mrb[19].mxu1  ;;  %v1937_v0 = vld [vmem:[%s2607_s10] sm:$0xff]  }
 0x77c   : > { %1815 = vmatpush3.bf16.msra.mxu0 %v1937_v0 }
 0x77d   : > { %v1336_v45 = vadd.f32 %v1674_v41, %v1298_v43  ;;  %v1301_v46 = vsel %vm505_vm0, %v1298_v43, 0.0  ;;  %1816 = vmatprep.subr.bf16.mxu0 %v2128_v8 }
 0x77e   : > { %1302 = vadd.xlane.f32.xlu1 %v1301_v46 }
 0x77f   : > { %1337 = vst.msk [vmem:[%s2498_s16] sm:$0xff] %vm505_vm0, %v1336_v45 }
 0x780   : > { %1817 = vmatpush3.bf16.msra.mxu0 %v1938_v52 }
 0x786   : > { %v1413_v24 = vld [vmem:[%s2498_s16] sm:$0xff] }
 0x80b   : > { %v1303_v47 = vpop.xlane.xlu1 %1302 }
 0x80c   : > { %v1304_v48 = vmul.f32 0.03125, %v1303_v47 }
 0x80e   : > { %v1305_v49 = vsub.f32 %v1298_v43, %v1304_v48 }
 0x810   : > { %v1306_v50 = vmul.f32 %v1305_v49, %v1305_v49 }
 0x812   : > { %v1307_v51 = vsel %vm505_vm0, %v1306_v50, 0.0 }
 0x813   : > { %1308 = vadd.xlane.f32.xlu0 %v1307_v51 }
 0x8a0   : > { %v1309_v54 = vpop.xlane.xlu0 %1308 }
 0x8a1   : > { %v1310_v55 = vmul.f32 0.03125, %v1309_v54 }
 0x8a3   : > { %v1311_v56 = vadd.f32 1e-05, %v1310_v55 }
 0x8a5   : > { %1965 = vrsqrt.f32 %v1311_v56 }
 0x8af   : > { %v1966_v57 = vpop.eup %1965 }
 0x8b0   : > { %v1313_v59 = vmul.f32 %v1966_v57, %v1305_v49 }
 0x8b2   : > { %v1320_v61 = vmul.f32 %v1672_v58, %v1313_v59 }
 0x8b4   : > { %v1327_v62 = vadd.f32 %v1673_v60, %v1320_v61 }
 0x8b6   : > { %v1328_v63 = vpack.c.bf16 %v1327_v62, %v1327_v62 }
 0x8b8   : > { %1819 = vmatmul.mubr.msk.bf16.vlgmr.msra.gmra.mrb[28].mxu0 %vm505_vm0, %v1328_v63 }
 0x98b   : > { %v1398_v10 = vpop.f32.mrb[28].mxu0 }
 0x98c   : > { %v1399_v11 = vadd.f32 %v1675_v9, %v1398_v10  ;;  %v1820_v12 = vpop.f32.mrb[29].mxu0 }
 0x98d   : > { %v1401_v13 = vpop.f32.mrb[30].mxu0 }
 0x98e   : > { %v1405_v14 = vmul.f32 %v1399_v11, %v1399_v11  ;;  %v1821_v15 = vpop.f32.mrb[31].mxu0  ;;  %v1404_v20 = vmul.f32 0.5, %v1399_v11 }
 0x990   : > { %v1406_v16 = vmul.f32 %v1405_v14, %v1399_v11 }
 0x992   : > { %v1407_v17 = vmul.f32 0.044715, %v1406_v16 }
 0x994   : > { %v1408_v18 = vadd.f32 %v1407_v17, %v1399_v11 }
 0x996   : > { %v1409_v19 = vmul.f32 0.7978846, %v1408_v18 }
 0x998   : > { %1967 = vtanh.f32 %v1409_v19 }
 0x9a2   : > { %v1968_v8 = vpop.eup %1967 }
 0x9a3   : > { %v1411_v21 = vadd.f32 1.0, %v1968_v8 }
 0x9a5   : > { %v1412_v22 = vmul.f32 %v1411_v21, %v1404_v20 }
 0x9a7   : > { %v1414_v23 = vpack.c.bf16 %v1412_v22, %v1412_v22 }
 0x9a9   : > { %1839 = vmatmul.mubr.bf16.vlgmr.msra.gmra.mrb[20].mxu1 %v1414_v23 }
 0xa7c   : > { %v1513_v25 = vpop.f32.mrb[20].mxu1 }
 0xa7d   : > { %v1519_v26 = vadd.f32 %v1513_v25, %v1413_v24  ;;  %v1840_v27 = vpop.f32.mrb[21].mxu1 }
 0xa7e   : > { %v1516_v28 = vpop.f32.mrb[22].mxu1 }
 0xa7f   : > { %1520 = vst.msk [vmem:[%s2498_s16] sm:$0xff] %vm505_vm0, %v1519_v26  ;;  %v1841_v29 = vpop.f32.mrb[23].mxu1 }
 0xa80   : > { %2066 = shalt.err (!%p2063_p11)
}
 0xa81   : > { %s2067_s22 = scalar_lea.hbm %s2551_s15, 128  ;;  %s2071_s19 = scalar_lea.hbm %s2643_s21, 256 }
 0xa82   : > { %p2068_p13 = scmp.ne.s32.totalorder %s2551_s15, %s2067_s22  ;;  %p2072_p6 = scmp.lt.u32.totalorder %s2551_s15, %s2643_s21 }
 0xa83   : > { %p2073_p5 = scmp.lt.u32.totalorder %s2071_s19, %s2067_s22  ;;  %p2075_p12 = scmp.lt.u32.totalorder %s2067_s22, %s2551_s15 }
 0xa84   : > { %p2069_p0 = pnand %p2068_p13, %p2644_p10 }
 0xa85   : > { %p2074_p9 = por %p2073_p5, %p2072_p6 }
 0xa86   : > { %p2070_p1 = pneg %p2069_p0 }
 0xa87   : > { %p2076_p2 = por %p2075_p12, %p2074_p9 }
 0xa89   : > { %p2077_p3 = pnand %p2076_p2, %p2070_p1 }
 0xa8b   : > { %2080 = shalt.err (!%p2077_p3)
}
 0xa8c   : > { %1854 = dma.vmem_to_hbm [thread:$0]  (%p2644_p10), %s2553_s25, 128, %s2551_s15, %s1522_s17  }
 0xa8d PF: > { %s2645_s26 = sld [smem:[#allocation18_spill]]  ;;  %s2646_s29 = sld [smem:[#allocation16_spill]] }
 0xa8e   : > { %s2647_s27 = sld [smem:[#allocation22_spill]] }
 0xa93   : > { %p1876_p4 = scmp.ge.s32.totalorder %s2645_s26, 2  ;;  %s1547_s18 = sand.u32 1, %s2646_s29  }
 0xa94   : > { %p2648_p7 = scmp.ne.s32.totalorder %s2647_s27, 0  ;;  %s1548_s14 = scalar_lea.sflag [#allocation8], %s1547_s18 }
 0xa96   : > { %p1867_p8 = pnand %p1876_p4, %p2648_p7 }
 0xa98   : > { %2106 = dma.done.wait (!%p1867_p8), %s1548_s14, 128  }
 0xa99   : > { %2108 = vsyncadd (!%p1867_p8), %s1548_s14, 4294967168  ;;  %s2649_s16 = sld [smem:[#allocation19_spill]]  ;;  %s2650_s22 = sld [smem:[#allocation17_spill]] }
 0xa9a   : > { %s2651_s15 = sld [smem:[#allocation20_spill]]  ;;  %s2652_s29 = smov %s2115_s30 }
 0xa9f   : > { %p26_p11 = scmp.ge.s32.totalorder %s2649_s16, 4   ;;  %s2653_s30 = smov %s2650_s22 }
 0xaa1   :  { %28 = sbr.rel (!%p26_p11) target bundleno = 7 (0x7), region = 124 }
 0xaa8   :  { %1553 = vsyncpa [#allocation7], 1 }
 0xaa9   :  { %1555 = vsyncpa [#allocation7 + $0x1], 1 }
 0xaaa   :  { %1556 = vsyncpa [#allocation10], 1 }
 0xaab   :  { %1557 = vsyncpa [#allocation8], 1 }
 0xaac   :  { %1559 = vsyncpa [#allocation8 + $0x1], 1 }

</bundles_post_ra>
